<compile_context>
chip_gen: v7x
topology: tpu7x:2x2x1
jax: 0.10.0
libtpu: 0.0.40
codegen_flags: <defaults>
</compile_context>

<pallas_src>
import jax
import jax.numpy as jnp
from jax import lax
from jax.experimental import pallas as pl
from jax.experimental.pallas import tpu as pltpu  # noqa: F401  (kept for parity)


# ---------------------------------------------------------------------------
# Pallas kernel: 2-layer LSTM with skew-interleaved recurrences.
# ---------------------------------------------------------------------------
def _lstm2_kernel(x_ref, wih0_ref, b0_ref, wf_ref, b1_ref, out_ref):
    B, H = out_ref.shape
    SB = x_ref.shape[0]
    S = SB // B
    H3, H4 = 3 * H, 4 * H

    # Batched layer-0 input projection (bias included): off the serial chain.
    z0_all = jnp.dot(x_ref[...], wih0_ref[...],
                     preferred_element_type=jnp.float32) + b0_ref[...]

    # Fused recurrent weight, vreg-resident, bf16 (single-pass MXU):
    #   rows 0:H   -> [ whh0 | wih1 ]
    #   rows H:2H  -> [   0  | whh1 ]
    wf = wf_ref[...]
    b1 = b1_ref[...]

    def cell(z, c):
        # z columns pre-permuted to (i, f, o, g) with i/f/o pre-scaled by 0.5:
        # one tanh over the whole 4H-wide z, then sigmoid = 0.5*t + 0.5.
        t = jnp.tanh(z)
        s = 0.5 * t[:, :H3] + 0.5
        i = s[:, :H]
        f = s[:, H:2 * H]
        o = s[:, 2 * H:H3]
        g = t[:, H3:H4]
        c_new = f * c + i * g
        h_new = o * jnp.tanh(c_new)
        return h_new, c_new

    zeros = jnp.zeros((B, H), jnp.float32)
    h0, c0 = zeros, zeros
    h1, c1 = zeros, zeros

    # Superstep 0: layer-0 step 0 only (h0_{-1} = 0 -> no recurrent matmul).
    h0, c0 = cell(z0_all[:B, :], c0)

    # Supersteps 1..S-1 (fully unrolled): layer-0 step s and layer-1 step s-1
    # share one fused MXU push on [h0_{s-1}, h1_{s-2}].
    for s in range(1, S):
        lhs = jnp.concatenate([h0, h1], axis=-1).astype(jnp.bfloat16)
        zf = jnp.dot(lhs, wf, preferred_element_type=jnp.float32)
        z0 = z0_all[s * B:(s + 1) * B, :] + zf[:, :H4]
        z1 = zf[:, H4:] + b1
        h0_next, c0_next = cell(z0, c0)          # layer 0, step s
        h1, c1 = cell(z1, c1)                    # layer 1, step s-1
        h0, c0 = h0_next, c0_next

    # Superstep S: layer-1 step S-1 only.
    lhs = jnp.concatenate([h0, h1], axis=-1).astype(jnp.bfloat16)
    z1 = jnp.dot(lhs, wf[:, H4:], preferred_element_type=jnp.float32) + b1
    h1, c1 = cell(z1, c1)

    out_ref[...] = h1.astype(out_ref.dtype)


# ---------------------------------------------------------------------------
# One-time parameter prep (gate permutation, 0.5 scaling, layer-1 fusion, bf16).
# ---------------------------------------------------------------------------
def _prep_gate_cols(w, H):
    """(i, f, g, o) -> (i, f, o, g) column permutation, then scale the
    sigmoid-gate (i, f, o) columns by 0.5 for the single-tanh gate path."""
    w = jnp.concatenate(
        [w[..., :2 * H], w[..., 3 * H:4 * H], w[..., 2 * H:3 * H]], axis=-1)
    return jnp.concatenate([0.5 * w[..., :3 * H], w[..., 3 * H:]], axis=-1)


def prepare_params(params):
    """Call ONCE; do not run per forward (keeps prep off the hot path)."""
    H = params["whh0"].shape[0]
    f32 = jnp.float32
    wih0 = _prep_gate_cols(params["wih0"].astype(f32), H)
    b0 = _prep_gate_cols(params["b0"].astype(f32), H)
    whh0 = _prep_gate_cols(params["whh0"].astype(f32), H)
    wih1 = _prep_gate_cols(params["wih1"].astype(f32), H)
    whh1 = _prep_gate_cols(params["whh1"].astype(f32), H)
    b1 = _prep_gate_cols(params["b1"].astype(f32), H)

    top = jnp.concatenate([whh0, wih1], axis=1)                       # [H, 8H]
    bot = jnp.concatenate([jnp.zeros((H, 4 * H), f32), whh1], axis=1)  # [H, 8H]
    wf = jnp.concatenate([top, bot], axis=0).astype(jnp.bfloat16)     # [2H, 8H]

    return {"wih0": wih0, "b0": b0, "wf": wf, "b1": b1}


# ---------------------------------------------------------------------------
# Jitted forward wrapper.
# ---------------------------------------------------------------------------
@jax.jit
def action_lstm_forward(x, prepped):
    """x: [B, S, D] (batch-first, like PyTorch). Returns h_n[-1]: [B, H]."""
    B, S, D = x.shape
    H = prepped["b1"].shape[1] // 4

    # Time-major + flatten so the layer-0 projection is one wide matmul.
    x2d = jnp.transpose(x, (1, 0, 2)).reshape(S * B, D).astype(jnp.float32)

    return pl.pallas_call(
        _lstm2_kernel,
        out_shape=jax.ShapeDtypeStruct((B, H), jnp.float32),
        grid=(1,),
        in_specs=[
            pl.BlockSpec((S * B, D), lambda i: (0, 0)),
            pl.BlockSpec((D, 4 * H), lambda i: (0, 0)),
            pl.BlockSpec((1, 4 * H), lambda i: (0, 0)),
            pl.BlockSpec((2 * H, 8 * H), lambda i: (0, 0)),
            pl.BlockSpec((1, 4 * H), lambda i: (0, 0)),
        ],
        out_specs=pl.BlockSpec((B, H), lambda i: (0, 0)),
    )(x2d, prepped["wih0"], prepped["b0"], prepped["wf"], prepped["b1"])


# ---------------------------------------------------------------------------
# Pure-JAX f32 reference (standard (i, f, g, o) gate order).
# ---------------------------------------------------------------------------
def action_lstm_ref(x, params):
    B, S, D = x.shape
    H = params["whh0"].shape[0]

    def run_layer(xs, w_ih, w_hh, b):
        def step(carry, x_t):
            h, c = carry
            z = x_t @ w_ih + h @ w_hh + b
            i = jax.nn.sigmoid(z[:, :H])
            f = jax.nn.sigmoid(z[:, H:2 * H])
            g = jnp.tanh(z[:, 2 * H:3 * H])
            o = jax.nn.sigmoid(z[:, 3 * H:])
            c = f * c + i * g
            h = o * jnp.tanh(c)
            return (h, c), h

        init = (jnp.zeros((B, H), jnp.float32), jnp.zeros((B, H), jnp.float32))
        (h, _), hs = lax.scan(step, init, xs)
        return hs, h

    xs = jnp.transpose(x, (1, 0, 2)).astype(jnp.float32)
    hs0, _ = run_layer(xs, params["wih0"], params["whh0"], params["b0"])
    _, h1 = run_layer(hs0, params["wih1"], params["whh1"], params["b1"])
    return h1


# ---------------------------------------------------------------------------
# Deterministic parameter init (PyTorch LSTM default: U(-1/sqrt(H), 1/sqrt(H))).
# Weights stored pre-transposed to [in_features, 4H], gate order (i, f, g, o);
# biases summed (b_ih + b_hh).
# ---------------------------------------------------------------------------
def init_params(key, input_dim, hidden_dim):
    H = hidden_dim
    bound = 1.0 / jnp.sqrt(jnp.float32(H))
    ks = jax.random.split(key, 10)

    def u(k, shape):
        return jax.random.uniform(k, shape, jnp.float32, -bound, bound)

    return {
        "wih0": u(ks[0], (input_dim, 4 * H)),
        "whh0": u(ks[1], (H, 4 * H)),
        "b0":   (u(ks[2], (1, 4 * H)) + u(ks[3], (1, 4 * H))),
        "wih1": u(ks[4], (H, 4 * H)),
        "whh1": u(ks[5], (H, 4 * H)),
        "b1":   (u(ks[6], (1, 4 * H)) + u(ks[7], (1, 4 * H))),
    }


if __name__ == "__main__":
    key = jax.random.PRNGKey(0)
    k_x, k_p = jax.random.split(key)

    batch, seq_len, input_dim, hidden_dim = 2, 8, 12, 32
    x = jax.random.normal(k_x, (batch, seq_len, input_dim), jnp.float32)
    params = init_params(k_p, input_dim, hidden_dim)
    prepped = prepare_params(params)          # one-time weight prep

    out = jax.block_until_ready(action_lstm_forward(x, prepped))
    ref = jax.block_until_ready(action_lstm_ref(x, params))

    assert out.shape == (batch, hidden_dim), out.shape
    err = float(jnp.max(jnp.abs(out - ref)))
    # Recurrent matmuls use bf16 MXU operands -> tolerance relaxed vs f32 ref.
    assert err < 2e-2, f"max abs err {err}"
    print("KERNEL_OK")
</pallas_src>

<mosaic_0001>
module attributes {stable_mosaic.version = 11 : i64} {
  func.func @_lstm2_kernel(%arg0: i32, %arg1: memref<16x12xf32, #tpu.memory_space<vmem>>, %arg2: memref<12x128xf32, #tpu.memory_space<vmem>>, %arg3: memref<1x128xf32, #tpu.memory_space<vmem>>, %arg4: memref<64x256xbf16, #tpu.memory_space<vmem>>, %arg5: memref<1x128xf32, #tpu.memory_space<vmem>>, %arg6: memref<2x32xf32, #tpu.memory_space<vmem>>) attributes {dimension_semantics = [#tpu.dimension_semantics<arbitrary>], iteration_bounds = array<i64: 1>, scalar_prefetch = 0 : i64, scratch_operands = 0 : i64, tpu.core_type = #tpu.core_type<tc>, window_params = [{pipeline_mode = #tpu.pipeline_mode<synchronous>, transform_indices = @transform_0, window_bounds = array<i64: 16, 12>}, {pipeline_mode = #tpu.pipeline_mode<synchronous>, transform_indices = @transform_1, window_bounds = array<i64: 12, 128>}, {pipeline_mode = #tpu.pipeline_mode<synchronous>, transform_indices = @transform_2, window_bounds = array<i64: 1, 128>}, {pipeline_mode = #tpu.pipeline_mode<synchronous>, transform_indices = @transform_3, window_bounds = array<i64: 64, 256>}, {pipeline_mode = #tpu.pipeline_mode<synchronous>, transform_indices = @transform_4, window_bounds = array<i64: 1, 128>}, {pipeline_mode = #tpu.pipeline_mode<synchronous>, transform_indices = @transform_5, window_bounds = array<i64: 2, 32>}]} {
    %c0 = arith.constant 0 : index
    %c0_0 = arith.constant 0 : index
    %0 = vector.load %arg1[%c0, %c0_0] : memref<16x12xf32, #tpu.memory_space<vmem>>, vector<16x12xf32>
    %c0_1 = arith.constant 0 : index
    %c0_2 = arith.constant 0 : index
    %1 = vector.load %arg2[%c0_1, %c0_2] : memref<12x128xf32, #tpu.memory_space<vmem>>, vector<12x128xf32>
    %cst = arith.constant dense<0.000000e+00> : vector<16x128xf32>
    %2 = tpu.matmul %0, %1, %cst {dimension_numbers = #tpu.dot_dimension_numbers<[1], [0], [0], [1], [0, 0, 1, 1], [], []>} : vector<16x12xf32>, vector<12x128xf32>, vector<16x128xf32> -> vector<16x128xf32>
    %c0_3 = arith.constant 0 : index
    %c0_4 = arith.constant 0 : index
    %3 = vector.load %arg3[%c0_3, %c0_4] : memref<1x128xf32, #tpu.memory_space<vmem>>, vector<1x128xf32>
    %4 = vector.broadcast %3 : vector<1x128xf32> to vector<16x128xf32>
    %5 = arith.addf %2, %4 : vector<16x128xf32>
    %c0_5 = arith.constant 0 : index
    %c0_6 = arith.constant 0 : index
    %6 = vector.load %arg4[%c0_5, %c0_6] : memref<64x256xbf16, #tpu.memory_space<vmem>>, vector<64x256xbf16>
    %c0_7 = arith.constant 0 : index
    %c0_8 = arith.constant 0 : index
    %7 = vector.load %arg5[%c0_7, %c0_8] : memref<1x128xf32, #tpu.memory_space<vmem>>, vector<1x128xf32>
    %cst_9 = arith.constant 0.000000e+00 : f32
    %8 = vector.broadcast %cst_9 : f32 to vector<2x32xf32>
    %9 = vector.extract_strided_slice %5 {offsets = [0, 0], sizes = [2, 128], strides = [1, 1]} : vector<16x128xf32> to vector<2x128xf32>
    %10 = math.tanh %9 : vector<2x128xf32>
    %11 = vector.extract_strided_slice %10 {offsets = [0, 0], sizes = [2, 96], strides = [1, 1]} : vector<2x128xf32> to vector<2x96xf32>
    %cst_10 = arith.constant 5.000000e-01 : f32
    %12 = vector.broadcast %cst_10 : f32 to vector<2x96xf32>
    %13 = arith.mulf %12, %11 : vector<2x96xf32>
    %cst_11 = arith.constant 5.000000e-01 : f32
    %14 = vector.broadcast %cst_11 : f32 to vector<2x96xf32>
    %15 = arith.addf %13, %14 : vector<2x96xf32>
    %16 = vector.extract_strided_slice %15 {offsets = [0, 0], sizes = [2, 32], strides = [1, 1]} : vector<2x96xf32> to vector<2x32xf32>
    %17 = vector.extract_strided_slice %15 {offsets = [0, 32], sizes = [2, 32], strides = [1, 1]} : vector<2x96xf32> to vector<2x32xf32>
    %18 = vector.extract_strided_slice %15 {offsets = [0, 64], sizes = [2, 32], strides = [1, 1]} : vector<2x96xf32> to vector<2x32xf32>
    %19 = vector.extract_strided_slice %10 {offsets = [0, 96], sizes = [2, 32], strides = [1, 1]} : vector<2x128xf32> to vector<2x32xf32>
    %20 = arith.mulf %17, %8 : vector<2x32xf32>
    %21 = arith.mulf %16, %19 : vector<2x32xf32>
    %22 = arith.addf %20, %21 : vector<2x32xf32>
    %23 = math.tanh %22 : vector<2x32xf32>
    %24 = arith.mulf %18, %23 : vector<2x32xf32>
    %25 = tpu.concatenate %24, %8 in 1 : vector<2x32xf32>, vector<2x32xf32> -> vector<2x64xf32>
    %26 = arith.truncf %25 : vector<2x64xf32> to vector<2x64xbf16>
    %cst_12 = arith.constant dense<0.000000e+00> : vector<2x256xf32>
    %27 = tpu.matmul %26, %6, %cst_12 {dimension_numbers = #tpu.dot_dimension_numbers<[1], [0], [0], [1], [0, 0, 1, 1], [], []>} : vector<2x64xbf16>, vector<64x256xbf16>, vector<2x256xf32> -> vector<2x256xf32>
    %28 = vector.extract_strided_slice %5 {offsets = [2, 0], sizes = [2, 128], strides = [1, 1]} : vector<16x128xf32> to vector<2x128xf32>
    %29 = vector.extract_strided_slice %27 {offsets = [0, 0], sizes = [2, 128], strides = [1, 1]} : vector<2x256xf32> to vector<2x128xf32>
    %30 = arith.addf %28, %29 : vector<2x128xf32>
    %31 = vector.extract_strided_slice %27 {offsets = [0, 128], sizes = [2, 128], strides = [1, 1]} : vector<2x256xf32> to vector<2x128xf32>
    %32 = vector.broadcast %7 : vector<1x128xf32> to vector<2x128xf32>
    %33 = arith.addf %31, %32 : vector<2x128xf32>
    %34 = math.tanh %30 : vector<2x128xf32>
    %35 = vector.extract_strided_slice %34 {offsets = [0, 0], sizes = [2, 96], strides = [1, 1]} : vector<2x128xf32> to vector<2x96xf32>
    %cst_13 = arith.constant 5.000000e-01 : f32
    %36 = vector.broadcast %cst_13 : f32 to vector<2x96xf32>
    %37 = arith.mulf %36, %35 : vector<2x96xf32>
    %cst_14 = arith.constant 5.000000e-01 : f32
    %38 = vector.broadcast %cst_14 : f32 to vector<2x96xf32>
    %39 = arith.addf %37, %38 : vector<2x96xf32>
    %40 = vector.extract_strided_slice %39 {offsets = [0, 0], sizes = [2, 32], strides = [1, 1]} : vector<2x96xf32> to vector<2x32xf32>
    %41 = vector.extract_strided_slice %39 {offsets = [0, 32], sizes = [2, 32], strides = [1, 1]} : vector<2x96xf32> to vector<2x32xf32>
    %42 = vector.extract_strided_slice %39 {offsets = [0, 64], sizes = [2, 32], strides = [1, 1]} : vector<2x96xf32> to vector<2x32xf32>
    %43 = vector.extract_strided_slice %34 {offsets = [0, 96], sizes = [2, 32], strides = [1, 1]} : vector<2x128xf32> to vector<2x32xf32>
    %44 = arith.mulf %41, %22 : vector<2x32xf32>
    %45 = arith.mulf %40, %43 : vector<2x32xf32>
    %46 = arith.addf %44, %45 : vector<2x32xf32>
    %47 = math.tanh %46 : vector<2x32xf32>
    %48 = arith.mulf %42, %47 : vector<2x32xf32>
    %49 = math.tanh %33 : vector<2x128xf32>
    %50 = vector.extract_strided_slice %49 {offsets = [0, 0], sizes = [2, 96], strides = [1, 1]} : vector<2x128xf32> to vector<2x96xf32>
    %cst_15 = arith.constant 5.000000e-01 : f32
    %51 = vector.broadcast %cst_15 : f32 to vector<2x96xf32>
    %52 = arith.mulf %51, %50 : vector<2x96xf32>
    %cst_16 = arith.constant 5.000000e-01 : f32
    %53 = vector.broadcast %cst_16 : f32 to vector<2x96xf32>
    %54 = arith.addf %52, %53 : vector<2x96xf32>
    %55 = vector.extract_strided_slice %54 {offsets = [0, 0], sizes = [2, 32], strides = [1, 1]} : vector<2x96xf32> to vector<2x32xf32>
    %56 = vector.extract_strided_slice %54 {offsets = [0, 32], sizes = [2, 32], strides = [1, 1]} : vector<2x96xf32> to vector<2x32xf32>
    %57 = vector.extract_strided_slice %54 {offsets = [0, 64], sizes = [2, 32], strides = [1, 1]} : vector<2x96xf32> to vector<2x32xf32>
    %58 = vector.extract_strided_slice %49 {offsets = [0, 96], sizes = [2, 32], strides = [1, 1]} : vector<2x128xf32> to vector<2x32xf32>
    %59 = arith.mulf %56, %8 : vector<2x32xf32>
    %60 = arith.mulf %55, %58 : vector<2x32xf32>
    %61 = arith.addf %59, %60 : vector<2x32xf32>
    %62 = math.tanh %61 : vector<2x32xf32>
    %63 = arith.mulf %57, %62 : vector<2x32xf32>
    %64 = tpu.concatenate %48, %63 in 1 : vector<2x32xf32>, vector<2x32xf32> -> vector<2x64xf32>
    %65 = arith.truncf %64 : vector<2x64xf32> to vector<2x64xbf16>
    %cst_17 = arith.constant dense<0.000000e+00> : vector<2x256xf32>
    %66 = tpu.matmul %65, %6, %cst_17 {dimension_numbers = #tpu.dot_dimension_numbers<[1], [0], [0], [1], [0, 0, 1, 1], [], []>} : vector<2x64xbf16>, vector<64x256xbf16>, vector<2x256xf32> -> vector<2x256xf32>
    %67 = vector.extract_strided_slice %5 {offsets = [4, 0], sizes = [2, 128], strides = [1, 1]} : vector<16x128xf32> to vector<2x128xf32>
    %68 = vector.extract_strided_slice %66 {offsets = [0, 0], sizes = [2, 128], strides = [1, 1]} : vector<2x256xf32> to vector<2x128xf32>
    %69 = arith.addf %67, %68 : vector<2x128xf32>
    %70 = vector.extract_strided_slice %66 {offsets = [0, 128], sizes = [2, 128], strides = [1, 1]} : vector<2x256xf32> to vector<2x128xf32>
    %71 = vector.broadcast %7 : vector<1x128xf32> to vector<2x128xf32>
    %72 = arith.addf %70, %71 : vector<2x128xf32>
    %73 = math.tanh %69 : vector<2x128xf32>
    %74 = vector.extract_strided_slice %73 {offsets = [0, 0], sizes = [2, 96], strides = [1, 1]} : vector<2x128xf32> to vector<2x96xf32>
    %cst_18 = arith.constant 5.000000e-01 : f32
    %75 = vector.broadcast %cst_18 : f32 to vector<2x96xf32>
    %76 = arith.mulf %75, %74 : vector<2x96xf32>
    %cst_19 = arith.constant 5.000000e-01 : f32
    %77 = vector.broadcast %cst_19 : f32 to vector<2x96xf32>
    %78 = arith.addf %76, %77 : vector<2x96xf32>
    %79 = vector.extract_strided_slice %78 {offsets = [0, 0], sizes = [2, 32], strides = [1, 1]} : vector<2x96xf32> to vector<2x32xf32>
    %80 = vector.extract_strided_slice %78 {offsets = [0, 32], sizes = [2, 32], strides = [1, 1]} : vector<2x96xf32> to vector<2x32xf32>
    %81 = vector.extract_strided_slice %78 {offsets = [0, 64], sizes = [2, 32], strides = [1, 1]} : vector<2x96xf32> to vector<2x32xf32>
    %82 = vector.extract_strided_slice %73 {offsets = [0, 96], sizes = [2, 32], strides = [1, 1]} : vector<2x128xf32> to vector<2x32xf32>
    %83 = arith.mulf %80, %46 : vector<2x32xf32>
    %84 = arith.mulf %79, %82 : vector<2x32xf32>
    %85 = arith.addf %83, %84 : vector<2x32xf32>
    %86 = math.tanh %85 : vector<2x32xf32>
    %87 = arith.mulf %81, %86 : vector<2x32xf32>
    %88 = math.tanh %72 : vector<2x128xf32>
    %89 = vector.extract_strided_slice %88 {offsets = [0, 0], sizes = [2, 96], strides = [1, 1]} : vector<2x128xf32> to vector<2x96xf32>
    %cst_20 = arith.constant 5.000000e-01 : f32
    %90 = vector.broadcast %cst_20 : f32 to vector<2x96xf32>
    %91 = arith.mulf %90, %89 : vector<2x96xf32>
    %cst_21 = arith.constant 5.000000e-01 : f32
    %92 = vector.broadcast %cst_21 : f32 to vector<2x96xf32>
    %93 = arith.addf %91, %92 : vector<2x96xf32>
    %94 = vector.extract_strided_slice %93 {offsets = [0, 0], sizes = [2, 32], strides = [1, 1]} : vector<2x96xf32> to vector<2x32xf32>
    %95 = vector.extract_strided_slice %93 {offsets = [0, 32], sizes = [2, 32], strides = [1, 1]} : vector<2x96xf32> to vector<2x32xf32>
    %96 = vector.extract_strided_slice %93 {offsets = [0, 64], sizes = [2, 32], strides = [1, 1]} : vector<2x96xf32> to vector<2x32xf32>
    %97 = vector.extract_strided_slice %88 {offsets = [0, 96], sizes = [2, 32], strides = [1, 1]} : vector<2x128xf32> to vector<2x32xf32>
    %98 = arith.mulf %95, %61 : vector<2x32xf32>
    %99 = arith.mulf %94, %97 : vector<2x32xf32>
    %100 = arith.addf %98, %99 : vector<2x32xf32>
    %101 = math.tanh %100 : vector<2x32xf32>
    %102 = arith.mulf %96, %101 : vector<2x32xf32>
    %103 = tpu.concatenate %87, %102 in 1 : vector<2x32xf32>, vector<2x32xf32> -> vector<2x64xf32>
    %104 = arith.truncf %103 : vector<2x64xf32> to vector<2x64xbf16>
    %cst_22 = arith.constant dense<0.000000e+00> : vector<2x256xf32>
    %105 = tpu.matmul %104, %6, %cst_22 {dimension_numbers = #tpu.dot_dimension_numbers<[1], [0], [0], [1], [0, 0, 1, 1], [], []>} : vector<2x64xbf16>, vector<64x256xbf16>, vector<2x256xf32> -> vector<2x256xf32>
    %106 = vector.extract_strided_slice %5 {offsets = [6, 0], sizes = [2, 128], strides = [1, 1]} : vector<16x128xf32> to vector<2x128xf32>
    %107 = vector.extract_strided_slice %105 {offsets = [0, 0], sizes = [2, 128], strides = [1, 1]} : vector<2x256xf32> to vector<2x128xf32>
    %108 = arith.addf %106, %107 : vector<2x128xf32>
    %109 = vector.extract_strided_slice %105 {offsets = [0, 128], sizes = [2, 128], strides = [1, 1]} : vector<2x256xf32> to vector<2x128xf32>
    %110 = vector.broadcast %7 : vector<1x128xf32> to vector<2x128xf32>
    %111 = arith.addf %109, %110 : vector<2x128xf32>
    %112 = math.tanh %108 : vector<2x128xf32>
    %113 = vector.extract_strided_slice %112 {offsets = [0, 0], sizes = [2, 96], strides = [1, 1]} : vector<2x128xf32> to vector<2x96xf32>
    %cst_23 = arith.constant 5.000000e-01 : f32
    %114 = vector.broadcast %cst_23 : f32 to vector<2x96xf32>
    %115 = arith.mulf %114, %113 : vector<2x96xf32>
    %cst_24 = arith.constant 5.000000e-01 : f32
    %116 = vector.broadcast %cst_24 : f32 to vector<2x96xf32>
    %117 = arith.addf %115, %116 : vector<2x96xf32>
    %118 = vector.extract_strided_slice %117 {offsets = [0, 0], sizes = [2, 32], strides = [1, 1]} : vector<2x96xf32> to vector<2x32xf32>
    %119 = vector.extract_strided_slice %117 {offsets = [0, 32], sizes = [2, 32], strides = [1, 1]} : vector<2x96xf32> to vector<2x32xf32>
    %120 = vector.extract_strided_slice %117 {offsets = [0, 64], sizes = [2, 32], strides = [1, 1]} : vector<2x96xf32> to vector<2x32xf32>
    %121 = vector.extract_strided_slice %112 {offsets = [0, 96], sizes = [2, 32], strides = [1, 1]} : vector<2x128xf32> to vector<2x32xf32>
    %122 = arith.mulf %119, %85 : vector<2x32xf32>
    %123 = arith.mulf %118, %121 : vector<2x32xf32>
    %124 = arith.addf %122, %123 : vector<2x32xf32>
    %125 = math.tanh %124 : vector<2x32xf32>
    %126 = arith.mulf %120, %125 : vector<2x32xf32>
    %127 = math.tanh %111 : vector<2x128xf32>
    %128 = vector.extract_strided_slice %127 {offsets = [0, 0], sizes = [2, 96], strides = [1, 1]} : vector<2x128xf32> to vector<2x96xf32>
    %cst_25 = arith.constant 5.000000e-01 : f32
    %129 = vector.broadcast %cst_25 : f32 to vector<2x96xf32>
    %130 = arith.mulf %129, %128 : vector<2x96xf32>
    %cst_26 = arith.constant 5.000000e-01 : f32
    %131 = vector.broadcast %cst_26 : f32 to vector<2x96xf32>
    %132 = arith.addf %130, %131 : vector<2x96xf32>
    %133 = vector.extract_strided_slice %132 {offsets = [0, 0], sizes = [2, 32], strides = [1, 1]} : vector<2x96xf32> to vector<2x32xf32>
    %134 = vector.extract_strided_slice %132 {offsets = [0, 32], sizes = [2, 32], strides = [1, 1]} : vector<2x96xf32> to vector<2x32xf32>
    %135 = vector.extract_strided_slice %132 {offsets = [0, 64], sizes = [2, 32], strides = [1, 1]} : vector<2x96xf32> to vector<2x32xf32>
    %136 = vector.extract_strided_slice %127 {offsets = [0, 96], sizes = [2, 32], strides = [1, 1]} : vector<2x128xf32> to vector<2x32xf32>
    %137 = arith.mulf %134, %100 : vector<2x32xf32>
    %138 = arith.mulf %133, %136 : vector<2x32xf32>
    %139 = arith.addf %137, %138 : vector<2x32xf32>
    %140 = math.tanh %139 : vector<2x32xf32>
    %141 = arith.mulf %135, %140 : vector<2x32xf32>
    %142 = tpu.concatenate %126, %141 in 1 : vector<2x32xf32>, vector<2x32xf32> -> vector<2x64xf32>
    %143 = arith.truncf %142 : vector<2x64xf32> to vector<2x64xbf16>
    %cst_27 = arith.constant dense<0.000000e+00> : vector<2x256xf32>
    %144 = tpu.matmul %143, %6, %cst_27 {dimension_numbers = #tpu.dot_dimension_numbers<[1], [0], [0], [1], [0, 0, 1, 1], [], []>} : vector<2x64xbf16>, vector<64x256xbf16>, vector<2x256xf32> -> vector<2x256xf32>
    %145 = vector.extract_strided_slice %5 {offsets = [8, 0], sizes = [2, 128], strides = [1, 1]} : vector<16x128xf32> to vector<2x128xf32>
    %146 = vector.extract_strided_slice %144 {offsets = [0, 0], sizes = [2, 128], strides = [1, 1]} : vector<2x256xf32> to vector<2x128xf32>
    %147 = arith.addf %145, %146 : vector<2x128xf32>
    %148 = vector.extract_strided_slice %144 {offsets = [0, 128], sizes = [2, 128], strides = [1, 1]} : vector<2x256xf32> to vector<2x128xf32>
    %149 = vector.broadcast %7 : vector<1x128xf32> to vector<2x128xf32>
    %150 = arith.addf %148, %149 : vector<2x128xf32>
    %151 = math.tanh %147 : vector<2x128xf32>
    %152 = vector.extract_strided_slice %151 {offsets = [0, 0], sizes = [2, 96], strides = [1, 1]} : vector<2x128xf32> to vector<2x96xf32>
    %cst_28 = arith.constant 5.000000e-01 : f32
    %153 = vector.broadcast %cst_28 : f32 to vector<2x96xf32>
    %154 = arith.mulf %153, %152 : vector<2x96xf32>
    %cst_29 = arith.constant 5.000000e-01 : f32
    %155 = vector.broadcast %cst_29 : f32 to vector<2x96xf32>
    %156 = arith.addf %154, %155 : vector<2x96xf32>
    %157 = vector.extract_strided_slice %156 {offsets = [0, 0], sizes = [2, 32], strides = [1, 1]} : vector<2x96xf32> to vector<2x32xf32>
    %158 = vector.extract_strided_slice %156 {offsets = [0, 32], sizes = [2, 32], strides = [1, 1]} : vector<2x96xf32> to vector<2x32xf32>
    %159 = vector.extract_strided_slice %156 {offsets = [0, 64], sizes = [2, 32], strides = [1, 1]} : vector<2x96xf32> to vector<2x32xf32>
    %160 = vector.extract_strided_slice %151 {offsets = [0, 96], sizes = [2, 32], strides = [1, 1]} : vector<2x128xf32> to vector<2x32xf32>
    %161 = arith.mulf %158, %124 : vector<2x32xf32>
    %162 = arith.mulf %157, %160 : vector<2x32xf32>
    %163 = arith.addf %161, %162 : vector<2x32xf32>
    %164 = math.tanh %163 : vector<2x32xf32>
    %165 = arith.mulf %159, %164 : vector<2x32xf32>
    %166 = math.tanh %150 : vector<2x128xf32>
    %167 = vector.extract_strided_slice %166 {offsets = [0, 0], sizes = [2, 96], strides = [1, 1]} : vector<2x128xf32> to vector<2x96xf32>
    %cst_30 = arith.constant 5.000000e-01 : f32
    %168 = vector.broadcast %cst_30 : f32 to vector<2x96xf32>
    %169 = arith.mulf %168, %167 : vector<2x96xf32>
    %cst_31 = arith.constant 5.000000e-01 : f32
    %170 = vector.broadcast %cst_31 : f32 to vector<2x96xf32>
    %171 = arith.addf %169, %170 : vector<2x96xf32>
    %172 = vector.extract_strided_slice %171 {offsets = [0, 0], sizes = [2, 32], strides = [1, 1]} : vector<2x96xf32> to vector<2x32xf32>
    %173 = vector.extract_strided_slice %171 {offsets = [0, 32], sizes = [2, 32], strides = [1, 1]} : vector<2x96xf32> to vector<2x32xf32>
    %174 = vector.extract_strided_slice %171 {offsets = [0, 64], sizes = [2, 32], strides = [1, 1]} : vector<2x96xf32> to vector<2x32xf32>
    %175 = vector.extract_strided_slice %166 {offsets = [0, 96], sizes = [2, 32], strides = [1, 1]} : vector<2x128xf32> to vector<2x32xf32>
    %176 = arith.mulf %173, %139 : vector<2x32xf32>
    %177 = arith.mulf %172, %175 : vector<2x32xf32>
    %178 = arith.addf %176, %177 : vector<2x32xf32>
    %179 = math.tanh %178 : vector<2x32xf32>
    %180 = arith.mulf %174, %179 : vector<2x32xf32>
    %181 = tpu.concatenate %165, %180 in 1 : vector<2x32xf32>, vector<2x32xf32> -> vector<2x64xf32>
    %182 = arith.truncf %181 : vector<2x64xf32> to vector<2x64xbf16>
    %cst_32 = arith.constant dense<0.000000e+00> : vector<2x256xf32>
    %183 = tpu.matmul %182, %6, %cst_32 {dimension_numbers = #tpu.dot_dimension_numbers<[1], [0], [0], [1], [0, 0, 1, 1], [], []>} : vector<2x64xbf16>, vector<64x256xbf16>, vector<2x256xf32> -> vector<2x256xf32>
    %184 = vector.extract_strided_slice %5 {offsets = [10, 0], sizes = [2, 128], strides = [1, 1]} : vector<16x128xf32> to vector<2x128xf32>
    %185 = vector.extract_strided_slice %183 {offsets = [0, 0], sizes = [2, 128], strides = [1, 1]} : vector<2x256xf32> to vector<2x128xf32>
    %186 = arith.addf %184, %185 : vector<2x128xf32>
    %187 = vector.extract_strided_slice %183 {offsets = [0, 128], sizes = [2, 128], strides = [1, 1]} : vector<2x256xf32> to vector<2x128xf32>
    %188 = vector.broadcast %7 : vector<1x128xf32> to vector<2x128xf32>
    %189 = arith.addf %187, %188 : vector<2x128xf32>
    %190 = math.tanh %186 : vector<2x128xf32>
    %191 = vector.extract_strided_slice %190 {offsets = [0, 0], sizes = [2, 96], strides = [1, 1]} : vector<2x128xf32> to vector<2x96xf32>
    %cst_33 = arith.constant 5.000000e-01 : f32
    %192 = vector.broadcast %cst_33 : f32 to vector<2x96xf32>
    %193 = arith.mulf %192, %191 : vector<2x96xf32>
    %cst_34 = arith.constant 5.000000e-01 : f32
    %194 = vector.broadcast %cst_34 : f32 to vector<2x96xf32>
    %195 = arith.addf %193, %194 : vector<2x96xf32>
    %196 = vector.extract_strided_slice %195 {offsets = [0, 0], sizes = [2, 32], strides = [1, 1]} : vector<2x96xf32> to vector<2x32xf32>
    %197 = vector.extract_strided_slice %195 {offsets = [0, 32], sizes = [2, 32], strides = [1, 1]} : vector<2x96xf32> to vector<2x32xf32>
    %198 = vector.extract_strided_slice %195 {offsets = [0, 64], sizes = [2, 32], strides = [1, 1]} : vector<2x96xf32> to vector<2x32xf32>
    %199 = vector.extract_strided_slice %190 {offsets = [0, 96], sizes = [2, 32], strides = [1, 1]} : vector<2x128xf32> to vector<2x32xf32>
    %200 = arith.mulf %197, %163 : vector<2x32xf32>
    %201 = arith.mulf %196, %199 : vector<2x32xf32>
    %202 = arith.addf %200, %201 : vector<2x32xf32>
    %203 = math.tanh %202 : vector<2x32xf32>
    %204 = arith.mulf %198, %203 : vector<2x32xf32>
    %205 = math.tanh %189 : vector<2x128xf32>
    %206 = vector.extract_strided_slice %205 {offsets = [0, 0], sizes = [2, 96], strides = [1, 1]} : vector<2x128xf32> to vector<2x96xf32>
    %cst_35 = arith.constant 5.000000e-01 : f32
    %207 = vector.broadcast %cst_35 : f32 to vector<2x96xf32>
    %208 = arith.mulf %207, %206 : vector<2x96xf32>
    %cst_36 = arith.constant 5.000000e-01 : f32
    %209 = vector.broadcast %cst_36 : f32 to vector<2x96xf32>
    %210 = arith.addf %208, %209 : vector<2x96xf32>
    %211 = vector.extract_strided_slice %210 {offsets = [0, 0], sizes = [2, 32], strides = [1, 1]} : vector<2x96xf32> to vector<2x32xf32>
    %212 = vector.extract_strided_slice %210 {offsets = [0, 32], sizes = [2, 32], strides = [1, 1]} : vector<2x96xf32> to vector<2x32xf32>
    %213 = vector.extract_strided_slice %210 {offsets = [0, 64], sizes = [2, 32], strides = [1, 1]} : vector<2x96xf32> to vector<2x32xf32>
    %214 = vector.extract_strided_slice %205 {offsets = [0, 96], sizes = [2, 32], strides = [1, 1]} : vector<2x128xf32> to vector<2x32xf32>
    %215 = arith.mulf %212, %178 : vector<2x32xf32>
    %216 = arith.mulf %211, %214 : vector<2x32xf32>
    %217 = arith.addf %215, %216 : vector<2x32xf32>
    %218 = math.tanh %217 : vector<2x32xf32>
    %219 = arith.mulf %213, %218 : vector<2x32xf32>
    %220 = tpu.concatenate %204, %219 in 1 : vector<2x32xf32>, vector<2x32xf32> -> vector<2x64xf32>
    %221 = arith.truncf %220 : vector<2x64xf32> to vector<2x64xbf16>
    %cst_37 = arith.constant dense<0.000000e+00> : vector<2x256xf32>
    %222 = tpu.matmul %221, %6, %cst_37 {dimension_numbers = #tpu.dot_dimension_numbers<[1], [0], [0], [1], [0, 0, 1, 1], [], []>} : vector<2x64xbf16>, vector<64x256xbf16>, vector<2x256xf32> -> vector<2x256xf32>
    %223 = vector.extract_strided_slice %5 {offsets = [12, 0], sizes = [2, 128], strides = [1, 1]} : vector<16x128xf32> to vector<2x128xf32>
    %224 = vector.extract_strided_slice %222 {offsets = [0, 0], sizes = [2, 128], strides = [1, 1]} : vector<2x256xf32> to vector<2x128xf32>
    %225 = arith.addf %223, %224 : vector<2x128xf32>
    %226 = vector.extract_strided_slice %222 {offsets = [0, 128], sizes = [2, 128], strides = [1, 1]} : vector<2x256xf32> to vector<2x128xf32>
    %227 = vector.broadcast %7 : vector<1x128xf32> to vector<2x128xf32>
    %228 = arith.addf %226, %227 : vector<2x128xf32>
    %229 = math.tanh %225 : vector<2x128xf32>
    %230 = vector.extract_strided_slice %229 {offsets = [0, 0], sizes = [2, 96], strides = [1, 1]} : vector<2x128xf32> to vector<2x96xf32>
    %cst_38 = arith.constant 5.000000e-01 : f32
    %231 = vector.broadcast %cst_38 : f32 to vector<2x96xf32>
    %232 = arith.mulf %231, %230 : vector<2x96xf32>
    %cst_39 = arith.constant 5.000000e-01 : f32
    %233 = vector.broadcast %cst_39 : f32 to vector<2x96xf32>
    %234 = arith.addf %232, %233 : vector<2x96xf32>
    %235 = vector.extract_strided_slice %234 {offsets = [0, 0], sizes = [2, 32], strides = [1, 1]} : vector<2x96xf32> to vector<2x32xf32>
    %236 = vector.extract_strided_slice %234 {offsets = [0, 32], sizes = [2, 32], strides = [1, 1]} : vector<2x96xf32> to vector<2x32xf32>
    %237 = vector.extract_strided_slice %234 {offsets = [0, 64], sizes = [2, 32], strides = [1, 1]} : vector<2x96xf32> to vector<2x32xf32>
    %238 = vector.extract_strided_slice %229 {offsets = [0, 96], sizes = [2, 32], strides = [1, 1]} : vector<2x128xf32> to vector<2x32xf32>
    %239 = arith.mulf %236, %202 : vector<2x32xf32>
    %240 = arith.mulf %235, %238 : vector<2x32xf32>
    %241 = arith.addf %239, %240 : vector<2x32xf32>
    %242 = math.tanh %241 : vector<2x32xf32>
    %243 = arith.mulf %237, %242 : vector<2x32xf32>
    %244 = math.tanh %228 : vector<2x128xf32>
    %245 = vector.extract_strided_slice %244 {offsets = [0, 0], sizes = [2, 96], strides = [1, 1]} : vector<2x128xf32> to vector<2x96xf32>
    %cst_40 = arith.constant 5.000000e-01 : f32
    %246 = vector.broadcast %cst_40 : f32 to vector<2x96xf32>
    %247 = arith.mulf %246, %245 : vector<2x96xf32>
    %cst_41 = arith.constant 5.000000e-01 : f32
    %248 = vector.broadcast %cst_41 : f32 to vector<2x96xf32>
    %249 = arith.addf %247, %248 : vector<2x96xf32>
    %250 = vector.extract_strided_slice %249 {offsets = [0, 0], sizes = [2, 32], strides = [1, 1]} : vector<2x96xf32> to vector<2x32xf32>
    %251 = vector.extract_strided_slice %249 {offsets = [0, 32], sizes = [2, 32], strides = [1, 1]} : vector<2x96xf32> to vector<2x32xf32>
    %252 = vector.extract_strided_slice %249 {offsets = [0, 64], sizes = [2, 32], strides = [1, 1]} : vector<2x96xf32> to vector<2x32xf32>
    %253 = vector.extract_strided_slice %244 {offsets = [0, 96], sizes = [2, 32], strides = [1, 1]} : vector<2x128xf32> to vector<2x32xf32>
    %254 = arith.mulf %251, %217 : vector<2x32xf32>
    %255 = arith.mulf %250, %253 : vector<2x32xf32>
    %256 = arith.addf %254, %255 : vector<2x32xf32>
    %257 = math.tanh %256 : vector<2x32xf32>
    %258 = arith.mulf %252, %257 : vector<2x32xf32>
    %259 = tpu.concatenate %243, %258 in 1 : vector<2x32xf32>, vector<2x32xf32> -> vector<2x64xf32>
    %260 = arith.truncf %259 : vector<2x64xf32> to vector<2x64xbf16>
    %cst_42 = arith.constant dense<0.000000e+00> : vector<2x256xf32>
    %261 = tpu.matmul %260, %6, %cst_42 {dimension_numbers = #tpu.dot_dimension_numbers<[1], [0], [0], [1], [0, 0, 1, 1], [], []>} : vector<2x64xbf16>, vector<64x256xbf16>, vector<2x256xf32> -> vector<2x256xf32>
    %262 = vector.extract_strided_slice %5 {offsets = [14, 0], sizes = [2, 128], strides = [1, 1]} : vector<16x128xf32> to vector<2x128xf32>
    %263 = vector.extract_strided_slice %261 {offsets = [0, 0], sizes = [2, 128], strides = [1, 1]} : vector<2x256xf32> to vector<2x128xf32>
    %264 = arith.addf %262, %263 : vector<2x128xf32>
    %265 = vector.extract_strided_slice %261 {offsets = [0, 128], sizes = [2, 128], strides = [1, 1]} : vector<2x256xf32> to vector<2x128xf32>
    %266 = vector.broadcast %7 : vector<1x128xf32> to vector<2x128xf32>
    %267 = arith.addf %265, %266 : vector<2x128xf32>
    %268 = math.tanh %264 : vector<2x128xf32>
    %269 = vector.extract_strided_slice %268 {offsets = [0, 0], sizes = [2, 96], strides = [1, 1]} : vector<2x128xf32> to vector<2x96xf32>
    %cst_43 = arith.constant 5.000000e-01 : f32
    %270 = vector.broadcast %cst_43 : f32 to vector<2x96xf32>
    %271 = arith.mulf %270, %269 : vector<2x96xf32>
    %cst_44 = arith.constant 5.000000e-01 : f32
    %272 = vector.broadcast %cst_44 : f32 to vector<2x96xf32>
    %273 = arith.addf %271, %272 : vector<2x96xf32>
    %274 = vector.extract_strided_slice %273 {offsets = [0, 0], sizes = [2, 32], strides = [1, 1]} : vector<2x96xf32> to vector<2x32xf32>
    %275 = vector.extract_strided_slice %273 {offsets = [0, 32], sizes = [2, 32], strides = [1, 1]} : vector<2x96xf32> to vector<2x32xf32>
    %276 = vector.extract_strided_slice %273 {offsets = [0, 64], sizes = [2, 32], strides = [1, 1]} : vector<2x96xf32> to vector<2x32xf32>
    %277 = vector.extract_strided_slice %268 {offsets = [0, 96], sizes = [2, 32], strides = [1, 1]} : vector<2x128xf32> to vector<2x32xf32>
    %278 = arith.mulf %275, %241 : vector<2x32xf32>
    %279 = arith.mulf %274, %277 : vector<2x32xf32>
    %280 = arith.addf %278, %279 : vector<2x32xf32>
    %281 = math.tanh %280 : vector<2x32xf32>
    %282 = arith.mulf %276, %281 : vector<2x32xf32>
    %283 = math.tanh %267 : vector<2x128xf32>
    %284 = vector.extract_strided_slice %283 {offsets = [0, 0], sizes = [2, 96], strides = [1, 1]} : vector<2x128xf32> to vector<2x96xf32>
    %cst_45 = arith.constant 5.000000e-01 : f32
    %285 = vector.broadcast %cst_45 : f32 to vector<2x96xf32>
    %286 = arith.mulf %285, %284 : vector<2x96xf32>
    %cst_46 = arith.constant 5.000000e-01 : f32
    %287 = vector.broadcast %cst_46 : f32 to vector<2x96xf32>
    %288 = arith.addf %286, %287 : vector<2x96xf32>
    %289 = vector.extract_strided_slice %288 {offsets = [0, 0], sizes = [2, 32], strides = [1, 1]} : vector<2x96xf32> to vector<2x32xf32>
    %290 = vector.extract_strided_slice %288 {offsets = [0, 32], sizes = [2, 32], strides = [1, 1]} : vector<2x96xf32> to vector<2x32xf32>
    %291 = vector.extract_strided_slice %288 {offsets = [0, 64], sizes = [2, 32], strides = [1, 1]} : vector<2x96xf32> to vector<2x32xf32>
    %292 = vector.extract_strided_slice %283 {offsets = [0, 96], sizes = [2, 32], strides = [1, 1]} : vector<2x128xf32> to vector<2x32xf32>
    %293 = arith.mulf %290, %256 : vector<2x32xf32>
    %294 = arith.mulf %289, %292 : vector<2x32xf32>
    %295 = arith.addf %293, %294 : vector<2x32xf32>
    %296 = math.tanh %295 : vector<2x32xf32>
    %297 = arith.mulf %291, %296 : vector<2x32xf32>
    %298 = tpu.concatenate %282, %297 in 1 : vector<2x32xf32>, vector<2x32xf32> -> vector<2x64xf32>
    %299 = arith.truncf %298 : vector<2x64xf32> to vector<2x64xbf16>
    %300 = vector.extract_strided_slice %6 {offsets = [0, 128], sizes = [64, 128], strides = [1, 1]} : vector<64x256xbf16> to vector<64x128xbf16>
    %cst_47 = arith.constant dense<0.000000e+00> : vector<2x128xf32>
    %301 = tpu.matmul %299, %300, %cst_47 {dimension_numbers = #tpu.dot_dimension_numbers<[1], [0], [0], [1], [0, 0, 1, 1], [], []>} : vector<2x64xbf16>, vector<64x128xbf16>, vector<2x128xf32> -> vector<2x128xf32>
    %302 = vector.broadcast %7 : vector<1x128xf32> to vector<2x128xf32>
    %303 = arith.addf %301, %302 : vector<2x128xf32>
    %304 = math.tanh %303 : vector<2x128xf32>
    %305 = vector.extract_strided_slice %304 {offsets = [0, 0], sizes = [2, 96], strides = [1, 1]} : vector<2x128xf32> to vector<2x96xf32>
    %cst_48 = arith.constant 5.000000e-01 : f32
    %306 = vector.broadcast %cst_48 : f32 to vector<2x96xf32>
    %307 = arith.mulf %306, %305 : vector<2x96xf32>
    %cst_49 = arith.constant 5.000000e-01 : f32
    %308 = vector.broadcast %cst_49 : f32 to vector<2x96xf32>
    %309 = arith.addf %307, %308 : vector<2x96xf32>
    %310 = vector.extract_strided_slice %309 {offsets = [0, 0], sizes = [2, 32], strides = [1, 1]} : vector<2x96xf32> to vector<2x32xf32>
    %311 = vector.extract_strided_slice %309 {offsets = [0, 32], sizes = [2, 32], strides = [1, 1]} : vector<2x96xf32> to vector<2x32xf32>
    %312 = vector.extract_strided_slice %309 {offsets = [0, 64], sizes = [2, 32], strides = [1, 1]} : vector<2x96xf32> to vector<2x32xf32>
    %313 = vector.extract_strided_slice %304 {offsets = [0, 96], sizes = [2, 32], strides = [1, 1]} : vector<2x128xf32> to vector<2x32xf32>
    %314 = arith.mulf %311, %295 : vector<2x32xf32>
    %315 = arith.mulf %310, %313 : vector<2x32xf32>
    %316 = arith.addf %314, %315 : vector<2x32xf32>
    %317 = math.tanh %316 : vector<2x32xf32>
    %318 = arith.mulf %312, %317 : vector<2x32xf32>
    %c0_50 = arith.constant 0 : index
    %c0_51 = arith.constant 0 : index
    %319 = vector.load %arg6[%c0_50, %c0_51] : memref<2x32xf32, #tpu.memory_space<vmem>>, vector<2x32xf32>
    tpu.vector_store %arg6[%c0_50, %c0_51], %318 {strides = array<i32>} : memref<2x32xf32, #tpu.memory_space<vmem>>, vector<2x32xf32>,
    return
  }
  func.func @transform_0(%arg0: i32) -> (i32, i32) {
    %c0_i32 = arith.constant 0 : i32
    %c0_i32_0 = arith.constant 0 : i32
    %c0_i32_1 = arith.constant 0 : i32
    return %c0_i32, %c0_i32_0 : i32, i32
  }
  func.func @transform_1(%arg0: i32) -> (i32, i32) {
    %c0_i32 = arith.constant 0 : i32
    %c0_i32_0 = arith.constant 0 : i32
    %c0_i32_1 = arith.constant 0 : i32
    return %c0_i32, %c0_i32_0 : i32, i32
  }
  func.func @transform_2(%arg0: i32) -> (i32, i32) {
    %c0_i32 = arith.constant 0 : i32
    %c0_i32_0 = arith.constant 0 : i32
    %c0_i32_1 = arith.constant 0 : i32
    return %c0_i32, %c0_i32_0 : i32, i32
  }
  func.func @transform_3(%arg0: i32) -> (i32, i32) {
    %c0_i32 = arith.constant 0 : i32
    %c0_i32_0 = arith.constant 0 : i32
    %c0_i32_1 = arith.constant 0 : i32
    return %c0_i32, %c0_i32_0 : i32, i32
  }
  func.func @transform_4(%arg0: i32) -> (i32, i32) {
    %c0_i32 = arith.constant 0 : i32
    %c0_i32_0 = arith.constant 0 : i32
    %c0_i32_1 = arith.constant 0 : i32
    return %c0_i32, %c0_i32_0 : i32, i32
  }
  func.func @transform_5(%arg0: i32) -> (i32, i32) {
    %c0_i32 = arith.constant 0 : i32
    %c0_i32_0 = arith.constant 0 : i32
    %c0_i32_1 = arith.constant 0 : i32
    return %c0_i32, %c0_i32_0 : i32, i32
  }
}

</mosaic_0001>

<bundles_post_ra>
// kernel: action_lstm_forward.1
= control target key start
LH: loop header
LB: loop body
LE: loop exit
PB: predicated region body
PF: predicated region fallthrough
CT: control target
= control target key end

     0   :  { %10 = vsyncpa [#allocation3], 0  ;;  %s1491_s0 = inlined_call_operand.vmem [shape: f32[16,12], index: 0, kind: input, shape index: {}]   ;;  %s1492_s1 = inlined_call_operand.vmem [shape: f32[12,128], index: 1, kind: input, shape index: {}]   ;;  %s1493_s2 = inlined_call_operand.vmem [shape: f32[1,128], index: 2, kind: input, shape index: {}]   ;;  %s1494_s3 = inlined_call_operand.hbm [shape: bf16[64,256], index: 3, kind: input, shape index: {}]   ;;  %s1495_s4 = inlined_call_operand.vmem [shape: f32[1,128], index: 4, kind: input, shape index: {}]   ;;  %s1496_s5 = inlined_call_operand.hbm [shape: f32[2,32], index: 5, kind: output, shape index: {}]  }
   0x1   :  { %11 = vsyncpa [#allocation4], 0  ;;  %s1219_s18 = smov [#allocation2]   ;;  %s1171_s22 = scalar_lea.hbm %s1494_s3, 1024 }
   0x2   :  { %s23_s19 = sshll.u32 %s1219_s18, 4  ;;  %p1172_p0 = scmp.ne.s32.totalorder %s1494_s3, %s1171_s22  ;;  %s24_s19 = int_to_ptr.vmem [resolvable:$true] %s23_s19 }
   0x3   :  { %p1175_p1 = scmp.lt.u32.totalorder %s1171_s22, %s1494_s3 }
   0x5   :  { %p1177_p2 = pnand %p1175_p1, %p1172_p0 }
   0x7   :  { %1180 = shalt.err (!%p1177_p2)
}
   0x8   :  { %s1181_s27 = scalar_lea.vmem %s24_s19, 1024  ;;  %p1186_p4 = scmp.lt.s32.totalorder %s24_s19, %s24_s19 }
   0x9   :  { %p1182_p3 = scmp.ne.s32.totalorder %s24_s19, %s1181_s27  ;;  %p1187_p5 = scmp.lt.s32.totalorder %s1181_s27, %s1181_s27 }
   0xb   :  { %p1188_p6 = por %p1187_p5, %p1186_p4 }
   0xd   :  { %p1189_p7 = pnand %p1188_p6, %p1182_p3 }
   0xf   :  { %1192 = shalt.err (!%p1189_p7)
}
  0x10   :  { %s1220_s28 = smov 128   ;;  %s1221_s29 = smov 8  }
  0x11   :  { %29 = dma.hbm_to_vmem [thread:$0]  %s1494_s3, 1024, %s24_s19, [#allocation3], %s1220_s28, %s1220_s28, %s1221_s29  }
  0x12   :  { %1215 = dma.done.wait [#allocation3], 1024  }
  0x13   :  { %1216 = vsyncadd [#allocation3], 4294966272  ;;  %vm54_vm0 = vcmask 1043456   ;;  %vm47_vm1 = vcmask 97280   ;;  %vm1222_vm2 = vmmov 1   ;;  %v38_v0 = vld [vmem:[%s1492_s1] sm:$0xff] }
  0x14   :  { %vm1079_vm3 = vmpackc.low %vm54_vm0, %vm1222_vm2  ;;  %v39_v1 = vld [vmem:[%s1492_s1 + $0x8] sm:$0xf]  ;;  %v36_v2 = vld [vmem:[%s1491_s0] sm:$0xff]  ;;  %s1223_s1 = smov 32   ;;  %v1224_v27 = vmov 0   ;;  %vm166_vm4 = vcmask 261120  }
  0x15   :  { %v1078_v3 = vpack.c.bf16 %v39_v1, %v38_v0  ;;  %1063 = vmatprep.mubr.msk.f32.mxu0 %vm47_vm1, %v36_v2  ;;  %v37_v4 = vld [vmem:[%s1491_s0 + $0x8] sm:$0xff]  ;;  %v1029_v5 = vld [vmem:[%s1493_s2] ss:$0 sm:$0xff]  ;;  %v1301_v20 = vld [vmem:[#allocation2 + $0x14] ss:$8 sps:$4 sm:$0xff]   ;;  %245 = vmatprep.mubr.bf16.mxu1 %v1224_v27  ;;  %s1225_s0 = smov 64  }
  0x16   :  { %v1297_v18 = vld [vmem:[#allocation2 + $0x4] ss:$8 sps:$4 sm:$0xff]   ;;  %v1299_v19 = vld [vmem:[#allocation2] ss:$8 sps:$4 sm:$0xff]   ;;  %v1306_v21 = vld [vmem:[#allocation2 + $0x10] ss:$8 sps:$4 sm:$0xff]  }
  0x17   :  { %1080 = vmatprep.subr.msk.bf16.mxu0 %vm1079_vm3, %v1078_v3  ;;  %213 = vmatprep.subr.bf16.mxu1 %v1297_v18  ;;  %v1310_v22 = vld [vmem:[#allocation2 + $0x24] ss:$8 sps:$4 sm:$0xff]   ;;  %v1314_v23 = vld [vmem:[#allocation2 + $0x20] ss:$8 sps:$4 sm:$0xff]   ;;  %v1318_v24 = vld [vmem:[#allocation2 + $0x34] ss:$8 sps:$4 sm:$0xff]  }
  0x18   :  { %1083 = vmatpush3.bf16.msk.msra.mxu0 %vm1079_vm3, %v1078_v3  ;;  %214 = vmatpush1.bf16.msra.mxu1 %v1299_v19  ;;  %v1326_v26 = vld [vmem:[#allocation2 + $0x30] ss:$8 sps:$4 sm:$0xff]   ;;  %vm209_vm5 = vcmask 523264   ;;  %v1349_v33 = vld [vmem:[%s1495_s4] ss:$0 sm:$0xff]  ;;  %s1226_s4 = smov 96  }
  0x19   :  { %324 = vmatprep.subr.bf16.mxu0 %v1297_v18  ;;  %215 = vmatprep.subr.bf16.mxu1 %v1301_v20  ;;  %vm1228_vm6 = vmmov 0   ;;  %s1229_s17 = smov [#allocation5]   ;;  %vm1012_vm7 = vcmask 254976  }
  0x1a   :  { %s1020_s18 = sshll.u32 %s1229_s17, 4  ;;  %s1021_s18 = int_to_ptr.vmem [resolvable:$true] %s1020_s18 }
  0x1b   :  { %1064 = vmatmul.mubr.msk.f32.vlgmr.msra.gmra.mrb[0].mxu0 %vm47_vm1, %v37_v4  ;;  %s1193_s19 = scalar_lea.vmem %s1021_s18, 32  ;;  %p1198_p9 = scmp.lt.s32.totalorder %s1021_s18, %s1021_s18 }
  0x1c   :  { %325 = vmatpush1.bf16.msra.mxu0 %v1299_v19  ;;  %216 = vmatpush1.bf16.msra.mxu1 %v1306_v21  ;;  %p1194_p8 = scmp.ne.s32.totalorder %s1021_s18, %s1193_s19  ;;  %p1199_p10 = scmp.lt.s32.totalorder %s1193_s19, %s1193_s19 }
  0x1d   :  { %326 = vmatprep.subr.bf16.mxu0 %v1301_v20  ;;  %217 = vmatprep.subr.bf16.mxu1 %v1310_v22 }
  0x1e   :  { %356 = vmatprep.mubr.bf16.mxu0 %v1224_v27  ;;  %p1200_p11 = por %p1199_p10, %p1198_p9 }
  0x20   :  { %327 = vmatpush1.bf16.msra.mxu0 %v1306_v21  ;;  %218 = vmatpush1.bf16.msra.mxu1 %v1314_v23  ;;  %p1201_p12 = pnand %p1200_p11, %p1194_p8 }
  0x21   :  { %328 = vmatprep.subr.bf16.mxu0 %v1310_v22  ;;  %219 = vmatprep.subr.bf16.mxu1 %v1318_v24 }
  0x24   :  { %329 = vmatpush1.bf16.msra.mxu0 %v1314_v23  ;;  %220 = vmatpush1.bf16.msra.mxu1 %v1326_v26 }
  0x25   :  { %330 = vmatprep.subr.bf16.mxu0 %v1318_v24  ;;  %429 = vmatprep.subr.bf16.mxu1 %v1297_v18 }
  0x28   :  { %331 = vmatpush1.bf16.msra.mxu0 %v1326_v26 }
  0x29   :  { %534 = vmatprep.subr.bf16.mxu0 %v1297_v18 }
  0xee   :  { %v1065_v6 = vpop.f32.mrb[0].mxu0 }
  0xef   :  { %v1287_v7 = vadd.f32 %v1065_v6, %v1029_v5  ;;  %v124_v8 = vpop.f32.mrb[1].mxu0 }
  0xf0   :  { %v1289_v9 = vadd.f32 %v1029_v5, %v124_v8 }
  0xf2   :  { %1107 = vtanh.f32 %v1289_v9 }
  0xfc   :  { %v1108_v10 = vpop.eup %1107 }
  0xfd   :  { %147 = vrot.lane.b32.xlu0 %v1108_v10, %s1223_s1  ;;  %v143_v11 = vmul.f32 0.5, %v1108_v10 }
  0xff   :  { %v144_v12 = vadd.f32 0.5, %v143_v11 }
 0x101   :  { %v145_v15 = vmul.f32 0.0, %v144_v12 }
 0x16f   :  { %v148_v13 = vpop.permute.xlu0 %147 }
 0x170   :  { %v150_v14 = vmul.f32 %v148_v13, %v144_v12 }
 0x172   :  { %152 = vrot.lane.b32.xlu0 %v150_v14, %s1223_s1 }
 0x1e4   :  { %v153_v16 = vpop.permute.xlu0 %152 }
 0x1e5   :  { %v1294_v17 = vadd.f32 %v153_v16, %v145_v15 }
 0x1e7   :  { %1109 = vtanh.f32 %v1294_v17  ;;  %v269_v51 = vrot.slane %v1294_v17, 6 }
 0x1f1   :  { %v1110_v25 = vpop.eup %1109 }
 0x1f2   :  { %158 = vrot.lane.b32.xlu1 %v1110_v25, %s1223_s1 }
 0x264   :  { %v159_v28 = vpop.permute.xlu1 %158 }
 0x265   :  { %v161_v29 = vmul.f32 %v159_v28, %v144_v12 }
 0x267   :  { %163 = vrot.lane.b32.xlu1 %v161_v29, %s1225_s0 }
 0x2d9   :  { %v164_v30 = vpop.permute.xlu1 %163 }
 0x2da   :  { %v167_v31 = vsel %vm166_vm4, %v164_v30, 0.0 }
 0x2db   :  { %v168_v32 = vpack.c.bf16 %v167_v31, %v167_v31 }
 0x2dd   :  { %1041 = vmatmul.mubr.msk.bf16.vlgmr.msra.gmra.mrb[0].mxu1 %vm209_vm5, %v168_v32 }
 0x2de   :  { %430 = vmatpush1.bf16.msra.mxu1 %v1299_v19  ;;  %461 = vmatprep.mubr.bf16.mxu1 %v1224_v27 }
 0x2df   :  { %431 = vmatprep.subr.bf16.mxu1 %v1301_v20 }
 0x2e2   :  { %432 = vmatpush1.bf16.msra.mxu1 %v1306_v21 }
 0x2e3   :  { %433 = vmatprep.subr.bf16.mxu1 %v1310_v22 }
 0x2e6   :  { %434 = vmatpush1.bf16.msra.mxu1 %v1314_v23 }
 0x2e7   :  { %435 = vmatprep.subr.bf16.mxu1 %v1318_v24 }
 0x2ea   :  { %436 = vmatpush1.bf16.msra.mxu1 %v1326_v26 }
 0x2eb   :  { %633 = vmatprep.subr.bf16.mxu1 %v1297_v18 }
 0x3b0   :  { %v247_v34 = vpop.f32.mrb[0].mxu1 }
 0x3b1   :  { %v255_v35 = vrot.slane %v247_v34, 6  ;;  %v249_v36 = vpop.f32.mrb[1].mxu1 }
 0x3b2   :  { %v264_v37 = vadd.f32 %v1349_v33, %v249_v36  ;;  %v251_v38 = vpop.f32.mrb[2].mxu1 }
 0x3b3   :  { %v257_v39 = vadd.f32 %v255_v35, %v1289_v9  ;;  %v252_v40 = vpop.f32.mrb[3].mxu1 }
 0x3b4   :  { %1111 = vtanh.f32 %v264_v37 }
 0x3b5   :  { %1113 = vtanh.f32 %v257_v39 }
 0x3be   :  { %v1112_v41 = vpop.eup %1111 }
 0x3bf   :  { %v1114_v42 = vpop.eup %1113  ;;  %293 = vrot.lane.b32.xlu0 %v1112_v41, %s1223_s1  ;;  %v289_v43 = vmul.f32 0.5, %v1112_v41 }
 0x3c0   :  { %273 = vrot.lane.b32.xlu1 %v1114_v42, %s1223_s1  ;;  %v266_v44 = vmul.f32 0.5, %v1114_v42 }
 0x3c1   :  { %v290_v45 = vadd.f32 0.5, %v289_v43 }
 0x3c2   :  { %v267_v47 = vadd.f32 0.5, %v266_v44 }
 0x3c3   :  { %v291_v52 = vmul.f32 0.0, %v290_v45 }
 0x3c4   :  { %v271_v54 = vmul.f32 %v269_v51, %v267_v47 }
 0x431   :  { %v294_v46 = vpop.permute.xlu0 %293 }
 0x432   :  { %v296_v48 = vmul.f32 %v294_v46, %v290_v45  ;;  %v274_v49 = vpop.permute.xlu1 %273 }
 0x433   :  { %v276_v50 = vmul.f32 %v274_v49, %v267_v47 }
 0x434   :  { %298 = vrot.lane.b32.xlu0 %v296_v48, %s1223_s1 }
 0x435   :  { %278 = vrot.lane.b32.xlu1 %v276_v50, %s1223_s1 }
 0x4a6   :  { %v299_v53 = vpop.permute.xlu0 %298 }
 0x4a7   :  { %v301_v55 = vadd.f32 %v299_v53, %v291_v52  ;;  %v279_v56 = vpop.permute.xlu1 %278 }
 0x4a8   :  { %v281_v57 = vadd.f32 %v279_v56, %v271_v54 }
 0x4a9   :  { %1115 = vtanh.f32 %v301_v55 }
 0x4aa   :  { %1117 = vtanh.f32 %v281_v57  ;;  %v374_v35 = vrot.slane %v281_v57, 6 }
 0x4b3   :  { %v1116_v58 = vpop.eup %1115 }
 0x4b4   :  { %v1118_v59 = vpop.eup %1117  ;;  %304 = vrot.lane.b32.xlu0 %v1116_v58, %s1223_s1 }
 0x4b5   :  { %284 = vrot.lane.b32.xlu1 %v1118_v59, %s1223_s1 }
 0x526   :  { %v305_v60 = vpop.permute.xlu0 %304 }
 0x527   :  { %v307_v61 = vmul.f32 %v305_v60, %v290_v45  ;;  %v285_v62 = vpop.permute.xlu1 %284 }
 0x528   :  { %v287_v63 = vmul.f32 %v285_v62, %v267_v47 }
 0x529   :  { %v313_v0 = vrot.slane %v307_v61, 6 }
 0x52a   :  { %309 = vrot.lane.b32.xlu0 %v287_v63, %s1225_s0 }
 0x52b   :  { %314 = vrot.lane.b32.xlu1 %v313_v0, %s1226_s4 }
 0x59c   :  { %v310_v1 = vpop.permute.xlu0 %309 }
 0x59d   :  { %v315_v2 = vpop.permute.xlu1 %314 }
 0x59e   :  { %v317_v3 = vsel %vm166_vm4, %v310_v1, %v315_v2 }
 0x59f   :  { %v318_v4 = vpack.c.bf16 %v317_v3, %v317_v3 }
 0x5a1   :  { %v320_v5 = vrot.slane %v318_v4, 1 }
 0x5a3   :  { %1043 = vmatmul.mubr.msk.bf16.vlgmr.msra.gmra.mrb[4].mxu0 %vm209_vm5, %v320_v5 }
 0x5a4   :  { %535 = vmatpush1.bf16.msra.mxu0 %v1299_v19  ;;  %566 = vmatprep.mubr.bf16.mxu0 %v1224_v27 }
 0x5a5   :  { %536 = vmatprep.subr.bf16.mxu0 %v1301_v20 }
 0x5a8   :  { %537 = vmatpush1.bf16.msra.mxu0 %v1306_v21 }
 0x5a9   :  { %538 = vmatprep.subr.bf16.mxu0 %v1310_v22 }
 0x5ac   :  { %539 = vmatpush1.bf16.msra.mxu0 %v1314_v23 }
 0x5ad   :  { %540 = vmatprep.subr.bf16.mxu0 %v1318_v24 }
 0x5b0   :  { %541 = vmatpush1.bf16.msra.mxu0 %v1326_v26 }
 0x5b1   :  { %738 = vmatprep.subr.bf16.mxu0 %v1297_v18 }
 0x676   :  { %v358_v6 = vpop.f32.mrb[4].mxu0 }
 0x677   :  { %v366_v8 = vrot.slane %v358_v6, 4  ;;  %v360_v10 = vpop.f32.mrb[5].mxu0 }
 0x678   :  { %v369_v11 = vadd.f32 %v1349_v33, %v360_v10  ;;  %v362_v12 = vpop.f32.mrb[6].mxu0 }
 0x679   :  { %v368_v13 = vadd.f32 %v366_v8, %v1289_v9  ;;  %v363_v14 = vpop.f32.mrb[7].mxu0 }
 0x67a   :  { %1119 = vtanh.f32 %v369_v11 }
 0x67b   :  { %1121 = vtanh.f32 %v368_v13 }
 0x684   :  { %v1120_v15 = vpop.eup %1119 }
 0x685   :  { %v1122_v16 = vpop.eup %1121  ;;  %398 = vrot.lane.b32.xlu0 %v1120_v15, %s1223_s1  ;;  %v394_v17 = vmul.f32 0.5, %v1120_v15 }
 0x686   :  { %378 = vrot.lane.b32.xlu1 %v1122_v16, %s1223_s1  ;;  %v371_v25 = vmul.f32 0.5, %v1122_v16 }
 0x687   :  { %v395_v28 = vadd.f32 0.5, %v394_v17 }
 0x688   :  { %v372_v30 = vadd.f32 0.5, %v371_v25 }
 0x689   :  { %v396_v36 = vmul.f32 %v395_v28, %v301_v55 }
 0x68a   :  { %v376_v38 = vmul.f32 %v374_v35, %v372_v30 }
 0x6f7   :  { %v399_v29 = vpop.permute.xlu0 %398 }
 0x6f8   :  { %v401_v31 = vmul.f32 %v399_v29, %v395_v28  ;;  %v379_v32 = vpop.permute.xlu1 %378 }
 0x6f9   :  { %v381_v34 = vmul.f32 %v379_v32, %v372_v30 }
 0x6fa   :  { %403 = vrot.lane.b32.xlu0 %v401_v31, %s1223_s1 }
 0x6fb   :  { %383 = vrot.lane.b32.xlu1 %v381_v34, %s1223_s1 }
 0x76c   :  { %v404_v37 = vpop.permute.xlu0 %403 }
 0x76d   :  { %v406_v39 = vadd.f32 %v404_v37, %v396_v36  ;;  %v384_v40 = vpop.permute.xlu1 %383 }
 0x76e   :  { %v386_v41 = vadd.f32 %v384_v40, %v376_v38 }
 0x76f   :  { %1123 = vtanh.f32 %v406_v39 }
 0x770   :  { %1125 = vtanh.f32 %v386_v41 }
 0x779   :  { %v1124_v42 = vpop.eup %1123 }
 0x77a   :  { %v1126_v43 = vpop.eup %1125  ;;  %409 = vrot.lane.b32.xlu0 %v1124_v42, %s1223_s1 }
 0x77b   :  { %389 = vrot.lane.b32.xlu1 %v1126_v43, %s1223_s1 }
 0x7ec   :  { %v410_v44 = vpop.permute.xlu0 %409 }
 0x7ed   :  { %v412_v45 = vmul.f32 %v410_v44, %v395_v28  ;;  %v390_v46 = vpop.permute.xlu1 %389 }
 0x7ee   :  { %v392_v47 = vmul.f32 %v390_v46, %v372_v30 }
 0x7ef   :  { %v418_v48 = vrot.slane %v412_v45, 4 }
 0x7f0   :  { %414 = vrot.lane.b32.xlu0 %v392_v47, %s1225_s0 }
 0x7f1   :  { %419 = vrot.lane.b32.xlu1 %v418_v48, %s1226_s4 }
 0x862   :  { %v415_v49 = vpop.permute.xlu0 %414 }
 0x863   :  { %v420_v50 = vpop.permute.xlu1 %419 }
 0x864   :  { %v422_v51 = vsel %vm166_vm4, %v415_v49, %v420_v50 }
 0x865   :  { %v423_v52 = vpack.c.bf16 %v422_v51, %v422_v51 }
 0x867   :  { %v425_v53 = vrot.slane %v423_v52, 2 }
 0x869   :  { %1044 = vmatmul.mubr.msk.bf16.vlgmr.msra.gmra.mrb[4].mxu1 %vm209_vm5, %v425_v53 }
 0x86a   :  { %634 = vmatpush1.bf16.msra.mxu1 %v1299_v19  ;;  %665 = vmatprep.mubr.bf16.mxu1 %v1224_v27 }
 0x86b   :  { %635 = vmatprep.subr.bf16.mxu1 %v1301_v20 }
 0x86e   :  { %636 = vmatpush1.bf16.msra.mxu1 %v1306_v21 }
 0x86f   :  { %637 = vmatprep.subr.bf16.mxu1 %v1310_v22 }
 0x872   :  { %638 = vmatpush1.bf16.msra.mxu1 %v1314_v23 }
 0x873   :  { %639 = vmatprep.subr.bf16.mxu1 %v1318_v24 }
 0x876   :  { %640 = vmatpush1.bf16.msra.mxu1 %v1326_v26 }
 0x877   :  { %843 = vmatprep.subr.bf16.mxu1 %v1297_v18 }
 0x93c   :  { %v463_v54 = vpop.f32.mrb[4].mxu1 }
 0x93d   :  { %v471_v55 = vrot.slane %v463_v54, 2  ;;  %v465_v56 = vpop.f32.mrb[5].mxu1 }
 0x93e   :  { %v474_v57 = vadd.f32 %v1349_v33, %v465_v56  ;;  %v467_v58 = vpop.f32.mrb[6].mxu1 }
 0x93f   :  { %v473_v59 = vadd.f32 %v471_v55, %v1289_v9  ;;  %v468_v60 = vpop.f32.mrb[7].mxu1  ;;  %v479_v9 = vrot.slane %v386_v41, 6 }
 0x940   :  { %1127 = vtanh.f32 %v474_v57 }
 0x941   :  { %1129 = vtanh.f32 %v473_v59 }
 0x94a   :  { %v1128_v61 = vpop.eup %1127 }
 0x94b   :  { %v1130_v62 = vpop.eup %1129  ;;  %503 = vrot.lane.b32.xlu0 %v1128_v61, %s1223_s1  ;;  %v499_v63 = vmul.f32 0.5, %v1128_v61 }
 0x94c   :  { %483 = vrot.lane.b32.xlu1 %v1130_v62, %s1223_s1  ;;  %v476_v0 = vmul.f32 0.5, %v1130_v62 }
 0x94d   :  { %v500_v1 = vadd.f32 0.5, %v499_v63 }
 0x94e   :  { %v477_v3 = vadd.f32 0.5, %v476_v0 }
 0x94f   :  { %v501_v8 = vmul.f32 %v500_v1, %v406_v39 }
 0x950   :  { %v481_v11 = vmul.f32 %v479_v9, %v477_v3 }
 0x9bd   :  { %v504_v2 = vpop.permute.xlu0 %503 }
 0x9be   :  { %v506_v4 = vmul.f32 %v504_v2, %v500_v1  ;;  %v484_v5 = vpop.permute.xlu1 %483 }
 0x9bf   :  { %v486_v6 = vmul.f32 %v484_v5, %v477_v3 }
 0x9c0   :  { %508 = vrot.lane.b32.xlu0 %v506_v4, %s1223_s1 }
 0x9c1   :  { %488 = vrot.lane.b32.xlu1 %v486_v6, %s1223_s1 }
 0xa32   :  { %v509_v10 = vpop.permute.xlu0 %508 }
 0xa33   :  { %v511_v12 = vadd.f32 %v509_v10, %v501_v8  ;;  %v489_v13 = vpop.permute.xlu1 %488 }
 0xa34   :  { %v491_v14 = vadd.f32 %v489_v13, %v481_v11 }
 0xa35   :  { %1131 = vtanh.f32 %v511_v12 }
 0xa36   :  { %1133 = vtanh.f32 %v491_v14  ;;  %v581_v53 = vrot.slane %v491_v14, 6 }
 0xa3f   :  { %v1132_v15 = vpop.eup %1131 }
 0xa40   :  { %v1134_v16 = vpop.eup %1133  ;;  %514 = vrot.lane.b32.xlu0 %v1132_v15, %s1223_s1 }
 0xa41   :  { %494 = vrot.lane.b32.xlu1 %v1134_v16, %s1223_s1 }
 0xab2   :  { %v515_v17 = vpop.permute.xlu0 %514 }
 0xab3   :  { %v517_v25 = vmul.f32 %v515_v17, %v500_v1  ;;  %v495_v28 = vpop.permute.xlu1 %494 }
 0xab4   :  { %v497_v29 = vmul.f32 %v495_v28, %v477_v3 }
 0xab5   :  { %v523_v30 = vrot.slane %v517_v25, 2 }
 0xab6   :  { %519 = vrot.lane.b32.xlu0 %v497_v29, %s1225_s0 }
 0xab7   :  { %524 = vrot.lane.b32.xlu1 %v523_v30, %s1226_s4 }
 0xb28   :  { %v520_v31 = vpop.permute.xlu0 %519 }
 0xb29   :  { %v525_v32 = vpop.permute.xlu1 %524 }
 0xb2a   :  { %v527_v34 = vsel %vm166_vm4, %v520_v31, %v525_v32 }
 0xb2b   :  { %v528_v35 = vpack.c.bf16 %v527_v34, %v527_v34 }
 0xb2d   :  { %v530_v36 = vrot.slane %v528_v35, 3 }
 0xb2f   :  { %1045 = vmatmul.mubr.msk.bf16.vlgmr.msra.gmra.mrb[8].mxu0 %vm209_vm5, %v530_v36 }
 0xb30   :  { %739 = vmatpush1.bf16.msra.mxu0 %v1299_v19  ;;  %770 = vmatprep.mubr.bf16.mxu0 %v1224_v27 }
 0xb31   :  { %740 = vmatprep.subr.bf16.mxu0 %v1301_v20 }
 0xb34   :  { %741 = vmatpush1.bf16.msra.mxu0 %v1306_v21 }
 0xb35   :  { %742 = vmatprep.subr.bf16.mxu0 %v1310_v22 }
 0xb38   :  { %743 = vmatpush1.bf16.msra.mxu0 %v1314_v23 }
 0xb39   :  { %744 = vmatprep.subr.bf16.mxu0 %v1318_v24 }
 0xb3c   :  { %745 = vmatpush1.bf16.msra.mxu0 %v1326_v26 }
 0xc02   :  { %v568_v37 = vpop.f32.mrb[8].mxu0 }
 0xc03   :  { %v575_v38 = vadd.f32 %v568_v37, %v1287_v7  ;;  %v570_v39 = vpop.f32.mrb[9].mxu0 }
 0xc04   :  { %v576_v40 = vadd.f32 %v1349_v33, %v570_v39  ;;  %v572_v41 = vpop.f32.mrb[10].mxu0 }
 0xc05   :  { %1135 = vtanh.f32 %v575_v38  ;;  %v573_v42 = vpop.f32.mrb[11].mxu0 }
 0xc06   :  { %1137 = vtanh.f32 %v576_v40 }
 0xc0f   :  { %v1136_v43 = vpop.eup %1135 }
 0xc10   :  { %v1138_v44 = vpop.eup %1137  ;;  %585 = vrot.lane.b32.xlu0 %v1136_v43, %s1223_s1  ;;  %v578_v45 = vmul.f32 0.5, %v1136_v43 }
 0xc11   :  { %605 = vrot.lane.b32.xlu1 %v1138_v44, %s1223_s1  ;;  %v601_v46 = vmul.f32 0.5, %v1138_v44 }
 0xc12   :  { %v579_v47 = vadd.f32 0.5, %v578_v45 }
 0xc13   :  { %v602_v49 = vadd.f32 0.5, %v601_v46 }
 0xc14   :  { %v583_v54 = vmul.f32 %v581_v53, %v579_v47 }
 0xc15   :  { %v603_v56 = vmul.f32 %v602_v49, %v511_v12 }
 0xc82   :  { %v586_v48 = vpop.permute.xlu0 %585 }
 0xc83   :  { %v588_v50 = vmul.f32 %v586_v48, %v579_v47  ;;  %v606_v51 = vpop.permute.xlu1 %605 }
 0xc84   :  { %v608_v52 = vmul.f32 %v606_v51, %v602_v49 }
 0xc85   :  { %590 = vrot.lane.b32.xlu0 %v588_v50, %s1223_s1 }
 0xc86   :  { %610 = vrot.lane.b32.xlu1 %v608_v52, %s1223_s1 }
 0xcf7   :  { %v591_v55 = vpop.permute.xlu0 %590 }
 0xcf8   :  { %v593_v57 = vadd.f32 %v591_v55, %v583_v54  ;;  %v611_v58 = vpop.permute.xlu1 %610 }
 0xcf9   :  { %v613_v59 = vadd.f32 %v611_v58, %v603_v56 }
 0xcfa   :  { %1139 = vtanh.f32 %v593_v57  ;;  %v683_v28 = vrot.slane %v593_v57, 6 }
 0xcfb   :  { %1141 = vtanh.f32 %v613_v59 }
 0xd04   :  { %v1140_v60 = vpop.eup %1139 }
 0xd05   :  { %v1142_v61 = vpop.eup %1141  ;;  %596 = vrot.lane.b32.xlu0 %v1140_v60, %s1223_s1 }
 0xd06   :  { %616 = vrot.lane.b32.xlu1 %v1142_v61, %s1223_s1 }
 0xd77   :  { %v597_v62 = vpop.permute.xlu0 %596 }
 0xd78   :  { %v599_v63 = vmul.f32 %v597_v62, %v579_v47  ;;  %v617_v0 = vpop.permute.xlu1 %616 }
 0xd79   :  { %v619_v1 = vmul.f32 %v617_v0, %v602_v49 }
 0xd7a   :  { %621 = vrot.lane.b32.xlu0 %v599_v63, %s1225_s0 }
 0xd7b   :  { %625 = vrot.lane.b32.xlu1 %v619_v1, %s1226_s4 }
 0xdec   :  { %v622_v2 = vpop.permute.xlu0 %621 }
 0xded   :  { %v626_v3 = vpop.permute.xlu1 %625 }
 0xdee   :  { %v628_v4 = vsel %vm166_vm4, %v622_v2, %v626_v3 }
 0xdef   :  { %v629_v5 = vpack.c.bf16 %v628_v4, %v628_v4 }
 0xdf1   :  { %1046 = vmatmul.mubr.msk.bf16.vlgmr.msra.gmra.mrb[8].mxu1 %vm209_vm5, %v629_v5 }
 0xdf2   :  { %844 = vmatpush1.bf16.msra.mxu1 %v1299_v19  ;;  %875 = vmatprep.mubr.bf16.mxu1 %v1224_v27 }
 0xdf3   :  { %845 = vmatprep.subr.bf16.mxu1 %v1301_v20 }
 0xdf6   :  { %846 = vmatpush1.bf16.msra.mxu1 %v1306_v21 }
 0xdf7   :  { %847 = vmatprep.subr.bf16.mxu1 %v1310_v22 }
 0xdfa   :  { %848 = vmatpush1.bf16.msra.mxu1 %v1314_v23 }
 0xdfb   :  { %849 = vmatprep.subr.bf16.mxu1 %v1318_v24 }
 0xdfe   :  { %850 = vmatpush1.bf16.msra.mxu1 %v1326_v26 }
 0xec4   :  { %v667_v6 = vpop.f32.mrb[8].mxu1 }
 0xec5   :  { %v675_v9 = vrot.slane %v667_v6, 6  ;;  %v669_v8 = vpop.f32.mrb[9].mxu1 }
 0xec6   :  { %v678_v10 = vadd.f32 %v1349_v33, %v669_v8  ;;  %v671_v19 = vpop.f32.mrb[10].mxu1 }
 0xec7   :  { %v677_v27 = vadd.f32 %v675_v9, %v1287_v7  ;;  %v672_v11 = vpop.f32.mrb[11].mxu1 }
 0xec8   :  { %1143 = vtanh.f32 %v678_v10 }
 0xec9   :  { %1145 = vtanh.f32 %v677_v27 }
 0xed2   :  { %v1144_v21 = vpop.eup %1143 }
 0xed3   :  { %v1146_v12 = vpop.eup %1145  ;;  %707 = vrot.lane.b32.xlu0 %v1144_v21, %s1223_s1  ;;  %v703_v23 = vmul.f32 0.5, %v1144_v21 }
 0xed4   :  { %687 = vrot.lane.b32.xlu1 %v1146_v12, %s1223_s1  ;;  %v680_v13 = vmul.f32 0.5, %v1146_v12 }
 0xed5   :  { %v704_v26 = vadd.f32 0.5, %v703_v23 }
 0xed6   :  { %v681_v15 = vadd.f32 0.5, %v680_v13 }
 0xed7   :  { %v705_v29 = vmul.f32 %v704_v26, %v613_v59 }
 0xed8   :  { %v685_v31 = vmul.f32 %v683_v28, %v681_v15 }
 0xf45   :  { %v708_v14 = vpop.permute.xlu0 %707 }
 0xf46   :  { %v710_v16 = vmul.f32 %v708_v14, %v704_v26  ;;  %v688_v17 = vpop.permute.xlu1 %687 }
 0xf47   :  { %v690_v25 = vmul.f32 %v688_v17, %v681_v15 }
 0xf48   :  { %712 = vrot.lane.b32.xlu0 %v710_v16, %s1223_s1 }
 0xf49   :  { %692 = vrot.lane.b32.xlu1 %v690_v25, %s1223_s1 }
 0xfba   :  { %v713_v30 = vpop.permute.xlu0 %712 }
 0xfbb   :  { %v715_v32 = vadd.f32 %v713_v30, %v705_v29  ;;  %v693_v34 = vpop.permute.xlu1 %692 }
 0xfbc   :  { %v695_v35 = vadd.f32 %v693_v34, %v685_v31 }
 0xfbd   :  { %1147 = vtanh.f32 %v715_v32 }
 0xfbe   :  { %1149 = vtanh.f32 %v695_v35  ;;  %v788_v1 = vrot.slane %v695_v35, 6 }
 0xfc7   :  { %v1148_v36 = vpop.eup %1147 }
 0xfc8   :  { %v1150_v37 = vpop.eup %1149  ;;  %718 = vrot.lane.b32.xlu0 %v1148_v36, %s1223_s1 }
 0xfc9   :  { %698 = vrot.lane.b32.xlu1 %v1150_v37, %s1223_s1 }
0x103a   :  { %v719_v38 = vpop.permute.xlu0 %718 }
0x103b   :  { %v721_v39 = vmul.f32 %v719_v38, %v704_v26  ;;  %v699_v40 = vpop.permute.xlu1 %698 }
0x103c   :  { %v701_v41 = vmul.f32 %v699_v40, %v681_v15 }
0x103d   :  { %v727_v42 = vrot.slane %v721_v39, 6 }
0x103e   :  { %723 = vrot.lane.b32.xlu0 %v701_v41, %s1225_s0 }
0x103f   :  { %728 = vrot.lane.b32.xlu1 %v727_v42, %s1226_s4 }
0x10b0   :  { %v724_v43 = vpop.permute.xlu0 %723 }
0x10b1   :  { %v729_v44 = vpop.permute.xlu1 %728 }
0x10b2   :  { %v731_v45 = vsel %vm166_vm4, %v724_v43, %v729_v44 }
0x10b3   :  { %v732_v46 = vpack.c.bf16 %v731_v45, %v731_v45 }
0x10b5   :  { %v734_v47 = vrot.slane %v732_v46, 1 }
0x10b7   :  { %1047 = vmatmul.mubr.msk.bf16.vlgmr.msra.gmra.mrb[12].mxu0 %vm209_vm5, %v734_v47 }
0x118a   :  { %v772_v48 = vpop.f32.mrb[12].mxu0 }
0x118b   :  { %v780_v49 = vrot.slane %v772_v48, 4  ;;  %v774_v50 = vpop.f32.mrb[13].mxu0 }
0x118c   :  { %v783_v51 = vadd.f32 %v1349_v33, %v774_v50  ;;  %v776_v52 = vpop.f32.mrb[14].mxu0 }
0x118d   :  { %v782_v53 = vadd.f32 %v780_v49, %v1287_v7  ;;  %v777_v54 = vpop.f32.mrb[15].mxu0  ;;  %v1227_v49 = vmov 0.0  }
0x118e   :  { %1151 = vtanh.f32 %v783_v51  ;;  %1066 = vmatprep.subr.bf16.mxu0 %v1227_v49  ;;  %1074 = vmatprep.mubr.msk.bf16.mxu0 %vm1228_vm6, %v1227_v49 }
0x118f   :  { %1153 = vtanh.f32 %v782_v53  ;;  %1067 = vmatpush3.bf16.msra.mxu0 %v1297_v18 }
0x1190   :  { %1068 = vmatprep.subr.bf16.mxu0 %v1227_v49 }
0x1193   :  { %1069 = vmatpush3.bf16.msra.mxu0 %v1301_v20 }
0x1194   :  { %1070 = vmatprep.subr.bf16.mxu0 %v1227_v49 }
0x1197   :  { %1071 = vmatpush3.bf16.msra.mxu0 %v1310_v22 }
0x1198   :  { %v1152_v55 = vpop.eup %1151  ;;  %1072 = vmatprep.subr.bf16.mxu0 %v1227_v49 }
0x1199   :  { %v1154_v56 = vpop.eup %1153  ;;  %812 = vrot.lane.b32.xlu0 %v1152_v55, %s1223_s1  ;;  %v808_v57 = vmul.f32 0.5, %v1152_v55 }
0x119a   :  { %792 = vrot.lane.b32.xlu1 %v1154_v56, %s1223_s1  ;;  %v785_v58 = vmul.f32 0.5, %v1154_v56 }
0x119b   :  { %v809_v59 = vadd.f32 0.5, %v808_v57  ;;  %1073 = vmatpush3.bf16.msra.mxu0 %v1318_v24 }
0x119c   :  { %v786_v61 = vadd.f32 0.5, %v785_v58 }
0x119d   :  { %v810_v2 = vmul.f32 %v809_v59, %v715_v32 }
0x119e   :  { %v790_v4 = vmul.f32 %v788_v1, %v786_v61 }
0x120b   :  { %v813_v60 = vpop.permute.xlu0 %812 }
0x120c   :  { %v815_v62 = vmul.f32 %v813_v60, %v809_v59  ;;  %v793_v63 = vpop.permute.xlu1 %792 }
0x120d   :  { %v795_v0 = vmul.f32 %v793_v63, %v786_v61 }
0x120e   :  { %817 = vrot.lane.b32.xlu0 %v815_v62, %s1223_s1 }
0x120f   :  { %797 = vrot.lane.b32.xlu1 %v795_v0, %s1223_s1 }
0x1280   :  { %v818_v3 = vpop.permute.xlu0 %817 }
0x1281   :  { %v820_v5 = vadd.f32 %v818_v3, %v810_v2  ;;  %v798_v6 = vpop.permute.xlu1 %797 }
0x1282   :  { %v800_v9 = vadd.f32 %v798_v6, %v790_v4 }
0x1283   :  { %1155 = vtanh.f32 %v820_v5 }
0x1284   :  { %1157 = vtanh.f32 %v800_v9 }
0x128d   :  { %v1156_v8 = vpop.eup %1155 }
0x128e   :  { %v1158_v10 = vpop.eup %1157  ;;  %823 = vrot.lane.b32.xlu0 %v1156_v8, %s1223_s1 }
0x128f   :  { %803 = vrot.lane.b32.xlu1 %v1158_v10, %s1223_s1 }
0x1300   :  { %v824_v19 = vpop.permute.xlu0 %823 }
0x1301   :  { %v826_v27 = vmul.f32 %v824_v19, %v809_v59  ;;  %v804_v11 = vpop.permute.xlu1 %803 }
0x1302   :  { %v806_v21 = vmul.f32 %v804_v11, %v786_v61 }
0x1303   :  { %v832_v12 = vrot.slane %v826_v27, 4 }
0x1304   :  { %828 = vrot.lane.b32.xlu0 %v806_v21, %s1225_s0 }
0x1305   :  { %833 = vrot.lane.b32.xlu1 %v832_v12, %s1226_s4 }
0x1376   :  { %v829_v23 = vpop.permute.xlu0 %828 }
0x1377   :  { %v834_v13 = vpop.permute.xlu1 %833 }
0x1378   :  { %v836_v26 = vsel %vm166_vm4, %v829_v23, %v834_v13 }
0x1379   :  { %v837_v14 = vpack.c.bf16 %v836_v26, %v836_v26 }
0x137b   :  { %v839_v15 = vrot.slane %v837_v14, 2 }
0x137d   :  { %1048 = vmatmul.mubr.msk.bf16.vlgmr.msra.gmra.mrb[12].mxu1 %vm209_vm5, %v839_v15 }
0x1450   :  { %v877_v16 = vpop.f32.mrb[12].mxu1 }
0x1451   :  { %v885_v17 = vrot.slane %v877_v16, 2  ;;  %v879_v25 = vpop.f32.mrb[13].mxu1 }
0x1452   :  { %v888_v28 = vadd.f32 %v1349_v33, %v879_v25  ;;  %v881_v29 = vpop.f32.mrb[14].mxu1 }
0x1453   :  { %v887_v30 = vadd.f32 %v885_v17, %v1287_v7  ;;  %v882_v31 = vpop.f32.mrb[15].mxu1  ;;  %v893_v7 = vrot.slane %v800_v9, 6 }
0x1454   :  { %1159 = vtanh.f32 %v888_v28 }
0x1455   :  { %1161 = vtanh.f32 %v887_v30 }
0x145e   :  { %v1160_v32 = vpop.eup %1159 }
0x145f   :  { %v1162_v34 = vpop.eup %1161  ;;  %917 = vrot.lane.b32.xlu0 %v1160_v32, %s1223_s1  ;;  %v913_v35 = vmul.f32 0.5, %v1160_v32 }
0x1460   :  { %897 = vrot.lane.b32.xlu1 %v1162_v34, %s1223_s1  ;;  %v890_v36 = vmul.f32 0.5, %v1162_v34 }
0x1461   :  { %v914_v37 = vadd.f32 0.5, %v913_v35 }
0x1462   :  { %v891_v39 = vadd.f32 0.5, %v890_v36 }
0x1463   :  { %v915_v43 = vmul.f32 %v914_v37, %v820_v5 }
0x1464   :  { %v895_v45 = vmul.f32 %v893_v7, %v891_v39 }
0x14d1   :  { %v918_v38 = vpop.permute.xlu0 %917 }
0x14d2   :  { %v920_v40 = vmul.f32 %v918_v38, %v914_v37  ;;  %v898_v41 = vpop.permute.xlu1 %897 }
0x14d3   :  { %v900_v42 = vmul.f32 %v898_v41, %v891_v39 }
0x14d4   :  { %922 = vrot.lane.b32.xlu0 %v920_v40, %s1223_s1 }
0x14d5   :  { %902 = vrot.lane.b32.xlu1 %v900_v42, %s1223_s1 }
0x1546   :  { %v923_v44 = vpop.permute.xlu0 %922 }
0x1547   :  { %v925_v46 = vadd.f32 %v923_v44, %v915_v43  ;;  %v903_v47 = vpop.permute.xlu1 %902 }
0x1548   :  { %v905_v48 = vadd.f32 %v903_v47, %v895_v45 }
0x1549   :  { %1163 = vtanh.f32 %v925_v46 }
0x154a   :  { %1165 = vtanh.f32 %v905_v48 }
0x1553   :  { %v1164_v50 = vpop.eup %1163 }
0x1554   :  { %v1166_v51 = vpop.eup %1165  ;;  %928 = vrot.lane.b32.xlu0 %v1164_v50, %s1223_s1 }
0x1555   :  { %908 = vrot.lane.b32.xlu1 %v1166_v51, %s1223_s1 }
0x15c6   :  { %v929_v52 = vpop.permute.xlu0 %928 }
0x15c7   :  { %v931_v53 = vmul.f32 %v929_v52, %v914_v37  ;;  %v909_v18 = vpop.permute.xlu1 %908 }
0x15c8   :  { %v911_v54 = vmul.f32 %v909_v18, %v891_v39 }
0x15c9   :  { %v937_v55 = vrot.slane %v931_v53, 2 }
0x15ca   :  { %933 = vrot.lane.b32.xlu0 %v911_v54, %s1225_s0 }
0x15cb   :  { %938 = vrot.lane.b32.xlu1 %v937_v55, %s1226_s4 }
0x163c   :  { %v934_v20 = vpop.permute.xlu0 %933 }
0x163d   :  { %v939_v56 = vpop.permute.xlu1 %938 }
0x163e   :  { %v941_v57 = vsel %vm166_vm4, %v934_v20, %v939_v56 }
0x163f   :  { %v942_v58 = vpack.c.bf16 %v941_v57, %v941_v57 }
0x1641   :  { %v944_v22 = vrot.slane %v942_v58, 3 }
0x1643   :  { %1075 = vmatmul.mubr.msk.bf16.vlgmr.msra.gmra.mrb[16].mxu0 %vm209_vm5, %v944_v22 }
0x1716   :  { %v982_v24 = vpop.f32.mrb[16].mxu0 }
0x1717   :  { %v983_v59 = vadd.f32 %v1349_v33, %v982_v24  ;;  %v1076_v60 = vpop.f32.mrb[17].mxu0 }
0x1718   :  { %v985_v61 = vpop.f32.mrb[18].mxu0 }
0x1719   :  { %1167 = vtanh.f32 %v983_v59  ;;  %v1077_v62 = vpop.f32.mrb[19].mxu0 }
0x1723   :  { %v1168_v63 = vpop.eup %1167 }
0x1724   :  { %993 = vrot.lane.b32.xlu0 %v1168_v63, %s1223_s1  ;;  %v989_v0 = vmul.f32 0.5, %v1168_v63 }
0x1726   :  { %v990_v1 = vadd.f32 0.5, %v989_v0 }
0x1728   :  { %v991_v4 = vmul.f32 %v990_v1, %v925_v46 }
0x1796   :  { %v994_v2 = vpop.permute.xlu0 %993 }
0x1797   :  { %v996_v3 = vmul.f32 %v994_v2, %v990_v1 }
0x1799   :  { %998 = vrot.lane.b32.xlu1 %v996_v3, %s1223_s1 }
0x180b   :  { %v999_v5 = vpop.permute.xlu1 %998 }
0x180c   :  { %v1001_v6 = vadd.f32 %v999_v5, %v991_v4 }
0x180e   :  { %1169 = vtanh.f32 %v1001_v6 }
0x1818   :  { %v1170_v9 = vpop.eup %1169 }
0x1819   :  { %1004 = vrot.lane.b32.xlu0 %v1170_v9, %s1223_s1 }
0x188b   :  { %v1005_v33 = vpop.permute.xlu0 %1004 }
0x188c   :  { %v1007_v8 = vmul.f32 %v1005_v33, %v990_v1 }
0x188e   :  { %1009 = vrot.lane.b32.xlu1 %v1007_v8, %s1225_s0 }
0x1900   :  { %v1010_v10 = vpop.permute.xlu1 %1009 }
0x1901   :  { %1013 = vst.msk [vmem:[#allocation5] sm:$0x3] %vm1012_vm7, %v1010_v10 }
0x1902   :  { %1204 = shalt.err (!%p1201_p12)
}
0x1903   :  { %s1205_s22 = scalar_lea.hbm %s1496_s5, 32 }
0x1904   :  { %p1206_p13 = scmp.ne.s32.totalorder %s1496_s5, %s1205_s22  ;;  %p1209_p0 = scmp.lt.u32.totalorder %s1205_s22, %s1496_s5 }
0x1906   :  { %p1211_p1 = pnand %p1209_p0, %p1206_p13 }
0x1908   :  { %1214 = shalt.err (!%p1211_p1)
}
0x1909   :  { %1023 = dma.vmem_to_hbm [thread:$0]  %s1021_s18, 32, %s1496_s5, [#allocation4]  }
0x190a   :  { %1217 = dma.done.wait [#allocation4], 32  }
0x190b   :  { %1218 = vsyncadd [#allocation4], 4294967264 }
0x190c   :  { %1027 = vsyncpa [#allocation3], 1 }
0x190d   :  { %1028 = vsyncpa [#allocation4], 1 }

</bundles_post_ra>
